<compile_context>
chip_gen: v7x
topology: tpu7x:2x2x1
jax: 0.10.0
libtpu: 0.0.40
codegen_flags: <defaults>
</compile_context>

<pallas_src>
import jax
import jax.numpy as jnp
from jax.experimental import pallas as pl
from jax.experimental.pallas import tpu as pltpu


class HParams:
    n_spect_channels = 8
    n_frames_per_step = 1
    encoder_embedding_dim = 16
    attention_rnn_dim = 32
    decoder_rnn_dim = 32
    prenet_dim = 16
    attention_dim = 16
    attention_location_n_filters = 4
    attention_location_kernel_size = 3
    max_decoder_steps = 1000
    gate_threshold = 0.5
    p_attention_dropout = 0.1
    p_decoder_dropout = 0.1


WEIGHT_ORDER = (
    "prenet_w1", "prenet_w2",                       # prenet (shared with in-kernel prenet)
    "wa1", "wa2", "wah", "ba",                      # attention LSTM cell (split by source)
    "wq", "wm", "wv", "wloc",                       # attention: query / memory / v / fused location
    "aaw1", "aab1", "aaw2", "aab2", "aaw3", "aab3",  # autoattentive MLP
    "wd1", "wd2", "wdh", "bd",                      # decoder LSTM cell
    "wp1", "wp2", "bp",                             # linear projection (mel)
    "wg1", "wg2", "bg",                             # gate layer (row vectors, VPU reduce)
)


# ----------------------------------------------------------------------------
# Prenet kernel for the teacher-forced inputs: one call for all T*B rows.
# ----------------------------------------------------------------------------
def _prenet_kernel(x_ref, w1_ref, w2_ref, d1_ref, d2_ref, o_ref):
    h = jnp.maximum(
        jnp.dot(x_ref[...], w1_ref[...], preferred_element_type=jnp.float32), 0.0
    ) * d1_ref[...]
    h = jnp.maximum(
        jnp.dot(h, w2_ref[...], preferred_element_type=jnp.float32), 0.0
    ) * d2_ref[...]
    o_ref[...] = h


def prenet_apply(x, w1, w2, key, p=0.5):
    n = x.shape[0]
    P = w1.shape[1]
    k1, k2 = jax.random.split(key)
    d1 = jax.random.bernoulli(k1, 1.0 - p, (n, P)).astype(jnp.float32) / (1.0 - p)
    d2 = jax.random.bernoulli(k2, 1.0 - p, (n, P)).astype(jnp.float32) / (1.0 - p)
    return pl.pallas_call(
        _prenet_kernel,
        out_shape=jax.ShapeDtypeStruct((n, P), jnp.float32),
    )(x, w1, w2, d1, d2)


# ----------------------------------------------------------------------------
# Fused autoregressive decoder kernel: grid=(T,), persistent VMEM state.
# ----------------------------------------------------------------------------
def _fused_decoder_kernel(
    # scalar prefetch
    coin_ref,
    # streamed per-step inputs
    pre_ref, datt_ref, ddec_ref, dpre_ref,
    # constant inputs
    lenmask_ref,
    wpre1_ref, wpre2_ref,
    wa1_ref, wa2_ref, wah_ref, ba_ref,
    wq_ref, wm_ref, wv_ref, wloc_ref,
    aaw1_ref, aab1_ref, aaw2_ref, aab2_ref, aaw3_ref, aab3_ref,
    wd1_ref, wd2_ref, wdh_ref, bd_ref,
    wp1_ref, wp2_ref, bp_ref,
    wg1_ref, wg2_ref, bg_ref,
    # outputs (streamed per step)
    mel_out_ref, gate_out_ref, align_out_ref,
    # persistent scratch (recurrent state)
    ah_ref, ac_ref, dh_ref, dc_ref, ctx_ref,
    aw_ref, cum_ref, mem_ref, pmem_ref, pmel_ref,
):
    f32 = jnp.float32
    step = pl.program_id(0)
    B, A = ah_ref.shape
    D = dh_ref.shape[1]
    E = ctx_ref.shape[1]
    T = aw_ref.shape[1]
    AT = pmem_ref.shape[2]
    P = pre_ref.shape[2]

    @pl.when(step == 0)
    def _init():
        ah_ref[...] = jnp.zeros_like(ah_ref)
        ac_ref[...] = jnp.zeros_like(ac_ref)
        dh_ref[...] = jnp.zeros_like(dh_ref)
        dc_ref[...] = jnp.zeros_like(dc_ref)
        ctx_ref[...] = jnp.zeros_like(ctx_ref)
        aw_ref[...] = jnp.zeros_like(aw_ref)
        cum_ref[...] = jnp.zeros_like(cum_ref)
        mem_ref[...] = jnp.zeros_like(mem_ref)       # memory[:, 0] = initial zero entry
        pmem_ref[...] = jnp.zeros_like(pmem_ref)     # memory_layer(0) == 0 (bias-free)
        pmel_ref[...] = jnp.zeros_like(pmel_ref)

    def lstm_cell(gates, c_prev, n):
        # PyTorch LSTMCell gate order: input, forget, cell(g), output
        i = jax.nn.sigmoid(gates[:, 0 * n:1 * n])
        f = jax.nn.sigmoid(gates[:, 1 * n:2 * n])
        g = jnp.tanh(gates[:, 2 * n:3 * n])
        o = jax.nn.sigmoid(gates[:, 3 * n:4 * n])
        c_new = f * c_prev + i * g
        return o * jnp.tanh(c_new), c_new

    # ---- decoder input: teacher forcing vs prenet(previous mel output) --------
    teacher = pre_ref[0]                               # (B, P)
    dpre = dpre_ref[0]                                 # (B, 2P) dropout masks
    h = jnp.maximum(jnp.dot(pmel_ref[...], wpre1_ref[...],
                            preferred_element_type=f32), 0.0) * dpre[:, :P]
    h = jnp.maximum(jnp.dot(h, wpre2_ref[...],
                            preferred_element_type=f32), 0.0) * dpre[:, P:]
    sel = (coin_ref[step] > 0).astype(f32)             # scheduled-sampling coin (SMEM)
    dec_in = sel * h + (1.0 - sel) * teacher

    # ---- attention LSTM cell: input = concat(prenet_out, attention_context) ---
    datt = datt_ref[0]
    gates_a = (jnp.dot(dec_in, wa1_ref[...], preferred_element_type=f32)
               + jnp.dot(ctx_ref[...], wa2_ref[...], preferred_element_type=f32)
               + jnp.dot(ah_ref[...], wah_ref[...], preferred_element_type=f32)
               + ba_ref[...])
    att_h, att_c = lstm_cell(gates_a, ac_ref[...], A)
    att_h = att_h * datt[:, :A]                        # F.dropout(p_attention_dropout)
    att_c = att_c * datt[:, A:]
    ah_ref[...] = att_h
    ac_ref[...] = att_c

    # ---- location-sensitive attention (fully batched) --------------------------
    Kw = wloc_ref.shape[0] // 2
    padc = (Kw - 1) // 2
    rows = jax.lax.broadcasted_iota(jnp.int32, (T, T), 0)
    cols = jax.lax.broadcasted_iota(jnp.int32, (T, T), 1)
    tpos = jax.lax.broadcasted_iota(jnp.int32, (B, T), 1)

    wloc = wloc_ref[...]                               # (2K, AT) fused conv+dense
    aw_prev = aw_ref[...]                              # (B, T) lane-dense
    cum_prev = cum_ref[...]

    # im2col of F.pad([aw; cum], (1,0)) + conv receptive field, built from
    # zero-filled shift matrices (MXU-tiny) and accumulated with VPU broadcasts.
    pa = jnp.zeros((B, T, AT), f32)
    for c, src in enumerate((aw_prev, cum_prev)):
        for k in range(Kw):
            off = k - 1 - padc                          # source index = t + off
            if off == 0:
                sh = src
            else:
                S = (rows == cols + off).astype(f32)    # (T, T) zero-filled shift
                sh = jnp.dot(src, S, preferred_element_type=f32)
            wrow = wloc[c * Kw + k:c * Kw + k + 1, :]   # (1, AT)
            pa = pa + sh[:, :, None] * wrow[None]

    pq = jnp.dot(att_h, wq_ref[...], preferred_element_type=f32)      # (B, AT)
    u = jnp.tanh(pq[:, None, :] + pa + pmem_ref[...])                 # (B, T, AT)
    e = jnp.sum(u * wv_ref[...][None], axis=-1)                       # (B, T) VPU reduce

    # masking: padded lengths (-inf, from host) + causal "memory grown so far"
    e = e + lenmask_ref[...]
    e = jnp.where(tpos <= step, e, -jnp.inf)
    m = jnp.max(e, axis=1, keepdims=True)
    p = jnp.exp(e - m)
    aw_new = p / jnp.sum(p, axis=1, keepdims=True)                    # (B, T)

    # context = bmm(aw, memory): broadcast-multiply + sublane reduce (no MXU)
    ctx_raw = jnp.sum(aw_new[:, :, None] * mem_ref[...], axis=1)      # (B, E)

    aw_ref[...] = aw_new
    cum_ref[...] = cum_prev + aw_new

    # ---- autoattentive residual MLP: E -> 2E -> 2E -> E -----------------------
    h1 = jnp.maximum(jnp.dot(ctx_raw, aaw1_ref[...], preferred_element_type=f32)
                     + aab1_ref[...], 0.0)
    h2 = jnp.maximum(jnp.dot(h1, aaw2_ref[...], preferred_element_type=f32)
                     + aab2_ref[...], 0.0)
    ctx_new = ctx_raw + (jnp.dot(h2, aaw3_ref[...], preferred_element_type=f32)
                         + aab3_ref[...])
    ctx_ref[...] = ctx_new

    # ---- update_memory: append new context at row step+1 (one-hot accumulate;
    #      automatically a no-op at the last step, matching the unused append) --
    pctx = jnp.dot(ctx_new, wm_ref[...], preferred_element_type=f32)  # (B, AT)
    rowpos = jax.lax.broadcasted_iota(jnp.int32, (B, T, 1), 1)
    onehot = (rowpos == step + 1).astype(f32)
    mem_ref[...] = mem_ref[...] + onehot * ctx_new[:, None, :]
    pmem_ref[...] = pmem_ref[...] + onehot * pctx[:, None, :]

    # ---- decoder LSTM cell: input = concat(attention_hidden, attention_context)
    ddec = ddec_ref[0]
    gates_d = (jnp.dot(att_h, wd1_ref[...], preferred_element_type=f32)
               + jnp.dot(ctx_new, wd2_ref[...], preferred_element_type=f32)
               + jnp.dot(dh_ref[...], wdh_ref[...], preferred_element_type=f32)
               + bd_ref[...])
    dec_h, dec_c = lstm_cell(gates_d, dc_ref[...], D)
    dec_h = dec_h * ddec[:, :D]                        # F.dropout(p_decoder_dropout)
    dec_c = dec_c * ddec[:, D:]
    dh_ref[...] = dec_h
    dc_ref[...] = dec_c

    # ---- projections on concat(decoder_hidden, attention_context) -------------
    mel = (jnp.dot(dec_h, wp1_ref[...], preferred_element_type=f32)
           + jnp.dot(ctx_new, wp2_ref[...], preferred_element_type=f32)
           + bp_ref[...])
    # gate: output dim 1 -> keep off the MXU (VPU multiply + lane reduce)
    gate = (jnp.sum(dec_h * wg1_ref[...], axis=1, keepdims=True)
            + jnp.sum(ctx_new * wg2_ref[...], axis=1, keepdims=True)
            + bg_ref[...])

    mel_out_ref[0] = mel
    gate_out_ref[0] = gate
    align_out_ref[0] = aw_new                          # lane-dense (B, T)
    pmel_ref[...] = mel                                # previous mel for next step


# ----------------------------------------------------------------------------
# Parameters (deterministic synthetic init)
# ----------------------------------------------------------------------------
def init_params(key, hp):
    P = hp.prenet_dim
    E = hp.encoder_embedding_dim
    A = hp.attention_rnn_dim
    D = hp.decoder_rnn_dim
    AT = hp.attention_dim
    NF = hp.attention_location_n_filters
    K = hp.attention_location_kernel_size
    M = hp.n_spect_channels * hp.n_frames_per_step
    ks = iter(jax.random.split(key, 40))

    def w(shape, scale=0.1):
        return (scale * jax.random.normal(next(ks), shape)).astype(jnp.float32)

    conv_w = w((NF, 2, K))          # location conv weight (torch layout: out, in, k)
    dense_wT = w((NF, AT))          # location dense weight (transposed)
    # conv (no bias) followed by bias-free dense is linear -> fold into one matrix
    wloc = conv_w.transpose(1, 2, 0).reshape(2 * K, NF) @ dense_wT      # (2K, AT)

    return dict(
        prenet_w1=w((M, P)), prenet_w2=w((P, P)),
        wa1=w((P, 4 * A)), wa2=w((E, 4 * A)), wah=w((A, 4 * A)), ba=w((1, 4 * A)),
        wq=w((A, AT)), wm=w((E, AT)), wv=w((1, AT)), wloc=wloc,
        aaw1=w((E, 2 * E)), aab1=w((1, 2 * E)),
        aaw2=w((2 * E, 2 * E)), aab2=w((1, 2 * E)),
        aaw3=w((2 * E, E)), aab3=w((1, E)),
        wd1=w((A, 4 * D)), wd2=w((E, 4 * D)), wdh=w((D, 4 * D)), bd=w((1, 4 * D)),
        wp1=w((D, M)), wp2=w((E, M)), bp=w((1, M)),
        wg1=w((1, D)), wg2=w((1, E)), bg=w((1, 1)),
    )


# ----------------------------------------------------------------------------
# Decoder.forward (teacher-forced training path) — fully jittable
# ----------------------------------------------------------------------------
def decoder_forward(params, hp, decoder_inputs, decoder_lengths, key):
    f32 = jnp.float32
    B, _, T_in = decoder_inputs.shape
    nf = hp.n_frames_per_step
    M = hp.n_spect_channels * nf
    T = T_in // nf
    E, A, D, AT, P = (hp.encoder_embedding_dim, hp.attention_rnn_dim,
                      hp.decoder_rnn_dim, hp.attention_dim, hp.prenet_dim)

    # parse_decoder_inputs + leading all-zero frame (only rows 0..T-1 feed the loop)
    di = jnp.transpose(decoder_inputs, (0, 2, 1)).reshape(B, T, M)
    di = jnp.transpose(di, (1, 0, 2))                                   # (T, B, M)
    teacher_in = jnp.concatenate([jnp.zeros((1, B, M), f32), di[:T - 1]], axis=0)

    key, kpre, kcoin, katt, kdec, kp2 = jax.random.split(key, 6)

    # prenet of teacher-forced inputs: one batched Pallas call for all T*B rows
    pre = prenet_apply(teacher_in.reshape(T * B, M),
                       params["prenet_w1"], params["prenet_w2"], kpre)
    pre = pre.reshape(T, B, P)

    # scheduled-sampling coins, pre-drawn on device (step 0 is always teacher)
    coin = ((jax.random.uniform(kcoin, (T,)) > 0.5)
            & (jnp.arange(T) > 0)).astype(jnp.int32)

    # dropout masks for all T steps (streamed per step through BlockSpecs)
    p_att, p_dec = hp.p_attention_dropout, hp.p_decoder_dropout
    drop_att = (jax.random.bernoulli(katt, 1 - p_att, (T, B, 2 * A)).astype(f32)
                / (1 - p_att))
    drop_dec = (jax.random.bernoulli(kdec, 1 - p_dec, (T, B, 2 * D)).astype(f32)
                / (1 - p_dec))
    drop_pre = jax.random.bernoulli(kp2, 0.5, (T, B, 2 * P)).astype(f32) / 0.5

    # ~get_mask_from_lengths -> additive -inf mask over memory positions
    lenmask = jnp.where(jnp.arange(T)[None, :] < decoder_lengths[:, None],
                        0.0, -jnp.inf).astype(f32)                     # (B, T)

    def step_spec(shape):
        return pl.BlockSpec((1,) + tuple(shape[1:]), lambda s, c: (s, 0, 0))

    def const_spec(shape):
        return pl.BlockSpec(tuple(shape), lambda s, c: (0, 0))

    weights = tuple(params[k] for k in WEIGHT_ORDER)
    in_specs = ([step_spec(pre.shape), step_spec(drop_att.shape),
                 step_spec(drop_dec.shape), step_spec(drop_pre.shape),
                 const_spec(lenmask.shape)]
                + [const_spec(w.shape) for w in weights])

    out_shape = (jax.ShapeDtypeStruct((T, B, M), f32),
                 jax.ShapeDtypeStruct((T, B, 1), f32),
                 jax.ShapeDtypeStruct((T, B, T), f32))
    out_specs = [pl.BlockSpec((1, B, M), lambda s, c: (s, 0, 0)),
                 pl.BlockSpec((1, B, 1), lambda s, c: (s, 0, 0)),
                 pl.BlockSpec((1, B, T), lambda s, c: (s, 0, 0))]

    scratch = [pltpu.VMEM((B, A), f32), pltpu.VMEM((B, A), f32),    # attention h/c
               pltpu.VMEM((B, D), f32), pltpu.VMEM((B, D), f32),    # decoder h/c
               pltpu.VMEM((B, E), f32),                             # attention context
               pltpu.VMEM((B, T), f32), pltpu.VMEM((B, T), f32),    # aw / cum (lane-dense)
               pltpu.VMEM((B, T, E), f32),                          # memory
               pltpu.VMEM((B, T, AT), f32),                         # processed memory
               pltpu.VMEM((B, M), f32)]                             # previous mel output

    mel_seq, gate_seq, align_seq = pl.pallas_call(
        _fused_decoder_kernel,
        out_shape=out_shape,
        grid_spec=pltpu.PrefetchScalarGridSpec(
            num_scalar_prefetch=1,
            grid=(T,),
            in_specs=in_specs,
            out_specs=out_specs,
            scratch_shapes=scratch),
        compiler_params=pltpu.CompilerParams(
            dimension_semantics=("arbitrary",)),
    )(coin, pre, drop_att, drop_dec, drop_pre, lenmask, *weights)

    # parse_decoder_outputs
    mel_outputs = jnp.transpose(mel_seq, (1, 0, 2))                     # (B, T, M)
    mel_outputs = mel_outputs.reshape(B, T * nf, hp.n_spect_channels)
    mel_outputs = jnp.transpose(mel_outputs, (0, 2, 1))                 # (B, n_spect, T*nf)
    gate_outputs = jnp.transpose(gate_seq[:, :, 0], (1, 0))             # (B, T)
    alignments = jnp.transpose(align_seq, (1, 0, 2))                    # (B, T, T)
    return mel_outputs, gate_outputs, alignments


if __name__ == "__main__":
    hp = HParams()
    key = jax.random.PRNGKey(0)
    kparam, kdata, krun = jax.random.split(key, 3)
    params = init_params(kparam, hp)

    B, T = 2, 8
    decoder_inputs = jax.random.normal(
        kdata, (B, hp.n_spect_channels, T * hp.n_frames_per_step), jnp.float32)
    decoder_lengths = jnp.array([8, 6], dtype=jnp.int32)

    fwd = jax.jit(lambda p, di, dl, k: decoder_forward(p, hp, di, dl, k))
    mel, gate, align = fwd(params, decoder_inputs, decoder_lengths, krun)
    jax.block_until_ready((mel, gate, align))

    assert mel.shape == (B, hp.n_spect_channels, T * hp.n_frames_per_step)
    assert gate.shape == (B, T)
    assert align.shape == (B, T, T)
    assert bool(jnp.all(jnp.isfinite(mel)))
    assert bool(jnp.all(jnp.isfinite(gate)))
    assert bool(jnp.all(jnp.isfinite(align)))
    # each alignment row is a distribution over the memory entries visited so far
    assert bool(jnp.all(jnp.abs(jnp.sum(align, axis=-1) - 1.0) < 1e-4))
    print("KERNEL_OK")
</pallas_src>

<mosaic_0001>
module attributes {stable_mosaic.version = 11 : i64} {
  func.func @_prenet_kernel(%arg0: memref<16x8xf32, #tpu.memory_space<vmem>>, %arg1: memref<8x16xf32, #tpu.memory_space<vmem>>, %arg2: memref<16x16xf32, #tpu.memory_space<vmem>>, %arg3: memref<16x16xf32, #tpu.memory_space<vmem>>, %arg4: memref<16x16xf32, #tpu.memory_space<vmem>>, %arg5: memref<16x16xf32, #tpu.memory_space<vmem>>) attributes {dimension_semantics = [], scalar_prefetch = 0 : i64, scratch_operands = 0 : i64, tpu.core_type = #tpu.core_type<tc>} {
    %c0 = arith.constant 0 : index
    %c0_0 = arith.constant 0 : index
    %0 = vector.load %arg0[%c0, %c0_0] : memref<16x8xf32, #tpu.memory_space<vmem>>, vector<16x8xf32>
    %c0_1 = arith.constant 0 : index
    %c0_2 = arith.constant 0 : index
    %1 = vector.load %arg1[%c0_1, %c0_2] : memref<8x16xf32, #tpu.memory_space<vmem>>, vector<8x16xf32>
    %cst = arith.constant dense<0.000000e+00> : vector<16x16xf32>
    %2 = tpu.matmul %0, %1, %cst {dimension_numbers = #tpu.dot_dimension_numbers<[1], [0], [0], [1], [0, 0, 1, 1], [], []>} : vector<16x8xf32>, vector<8x16xf32>, vector<16x16xf32> -> vector<16x16xf32>
    %cst_3 = arith.constant 0.000000e+00 : f32
    %3 = vector.broadcast %cst_3 : f32 to vector<16x16xf32>
    %4 = arith.maximumf %2, %3 : vector<16x16xf32>
    %c0_4 = arith.constant 0 : index
    %c0_5 = arith.constant 0 : index
    %5 = vector.load %arg3[%c0_4, %c0_5] : memref<16x16xf32, #tpu.memory_space<vmem>>, vector<16x16xf32>
    %6 = arith.mulf %4, %5 : vector<16x16xf32>
    %c0_6 = arith.constant 0 : index
    %c0_7 = arith.constant 0 : index
    %7 = vector.load %arg2[%c0_6, %c0_7] : memref<16x16xf32, #tpu.memory_space<vmem>>, vector<16x16xf32>
    %cst_8 = arith.constant dense<0.000000e+00> : vector<16x16xf32>
    %8 = tpu.matmul %6, %7, %cst_8 {dimension_numbers = #tpu.dot_dimension_numbers<[1], [0], [0], [1], [0, 0, 1, 1], [], []>} : vector<16x16xf32>, vector<16x16xf32>, vector<16x16xf32> -> vector<16x16xf32>
    %cst_9 = arith.constant 0.000000e+00 : f32
    %9 = vector.broadcast %cst_9 : f32 to vector<16x16xf32>
    %10 = arith.maximumf %8, %9 : vector<16x16xf32>
    %c0_10 = arith.constant 0 : index
    %c0_11 = arith.constant 0 : index
    %11 = vector.load %arg4[%c0_10, %c0_11] : memref<16x16xf32, #tpu.memory_space<vmem>>, vector<16x16xf32>
    %12 = arith.mulf %10, %11 : vector<16x16xf32>
    %c0_12 = arith.constant 0 : index
    %c0_13 = arith.constant 0 : index
    %13 = vector.load %arg5[%c0_12, %c0_13] : memref<16x16xf32, #tpu.memory_space<vmem>>, vector<16x16xf32>
    tpu.vector_store %arg5[%c0_12, %c0_13], %12 {strides = array<i32>} : memref<16x16xf32, #tpu.memory_space<vmem>>, vector<16x16xf32>,
    return
  }
}

module attributes {stable_mosaic.version = 11 : i64} {
  func.func @_fused_decoder_kernel(%arg0: i32, %arg1: memref<8xi32, #tpu.memory_space<smem>>, %arg2: memref<1x2x16xf32, #tpu.memory_space<vmem>>, %arg3: memref<1x2x64xf32, #tpu.memory_space<vmem>>, %arg4: memref<1x2x64xf32, #tpu.memory_space<vmem>>, %arg5: memref<1x2x32xf32, #tpu.memory_space<vmem>>, %arg6: memref<2x8xf32, #tpu.memory_space<vmem>>, %arg7: memref<8x16xf32, #tpu.memory_space<vmem>>, %arg8: memref<16x16xf32, #tpu.memory_space<vmem>>, %arg9: memref<16x128xf32, #tpu.memory_space<vmem>>, %arg10: memref<16x128xf32, #tpu.memory_space<vmem>>, %arg11: memref<32x128xf32, #tpu.memory_space<vmem>>, %arg12: memref<1x128xf32, #tpu.memory_space<vmem>>, %arg13: memref<32x16xf32, #tpu.memory_space<vmem>>, %arg14: memref<16x16xf32, #tpu.memory_space<vmem>>, %arg15: memref<1x16xf32, #tpu.memory_space<vmem>>, %arg16: memref<6x16xf32, #tpu.memory_space<vmem>>, %arg17: memref<16x32xf32, #tpu.memory_space<vmem>>, %arg18: memref<1x32xf32, #tpu.memory_space<vmem>>, %arg19: memref<32x32xf32, #tpu.memory_space<vmem>>, %arg20: memref<1x32xf32, #tpu.memory_space<vmem>>, %arg21: memref<32x16xf32, #tpu.memory_space<vmem>>, %arg22: memref<1x16xf32, #tpu.memory_space<vmem>>, %arg23: memref<32x128xf32, #tpu.memory_space<vmem>>, %arg24: memref<16x128xf32, #tpu.memory_space<vmem>>, %arg25: memref<32x128xf32, #tpu.memory_space<vmem>>, %arg26: memref<1x128xf32, #tpu.memory_space<vmem>>, %arg27: memref<32x8xf32, #tpu.memory_space<vmem>>, %arg28: memref<16x8xf32, #tpu.memory_space<vmem>>, %arg29: memref<1x8xf32, #tpu.memory_space<vmem>>, %arg30: memref<1x32xf32, #tpu.memory_space<vmem>>, %arg31: memref<1x16xf32, #tpu.memory_space<vmem>>, %arg32: memref<1x1xf32, #tpu.memory_space<vmem>>, %arg33: memref<1x2x8xf32, #tpu.memory_space<vmem>>, %arg34: memref<1x2x1xf32, #tpu.memory_space<vmem>>, %arg35: memref<1x2x8xf32, #tpu.memory_space<vmem>>, %arg36: memref<2x32xf32, #tpu.memory_space<vmem>>, %arg37: memref<2x32xf32, #tpu.memory_space<vmem>>, %arg38: memref<2x32xf32, #tpu.memory_space<vmem>>, %arg39: memref<2x32xf32, #tpu.memory_space<vmem>>, %arg40: memref<2x16xf32, #tpu.memory_space<vmem>>, %arg41: memref<2x8xf32, #tpu.memory_space<vmem>>, %arg42: memref<2x8xf32, #tpu.memory_space<vmem>>, %arg43: memref<2x8x16xf32, #tpu.memory_space<vmem>>, %arg44: memref<2x8x16xf32, #tpu.memory_space<vmem>>, %arg45: memref<2x8xf32, #tpu.memory_space<vmem>>) attributes {dimension_semantics = [#tpu.dimension_semantics<arbitrary>], iteration_bounds = array<i64: 8>, scalar_prefetch = 1 : i64, scratch_operands = 10 : i64, tpu.core_type = #tpu.core_type<tc>, window_params = [{transform_indices = @transform_0, window_bounds = array<i64: 1, 2, 16>}, {transform_indices = @transform_1, window_bounds = array<i64: 1, 2, 64>}, {transform_indices = @transform_2, window_bounds = array<i64: 1, 2, 64>}, {transform_indices = @transform_3, window_bounds = array<i64: 1, 2, 32>}, {pipeline_mode = #tpu.pipeline_mode<synchronous>, transform_indices = @transform_4, window_bounds = array<i64: 2, 8>}, {pipeline_mode = #tpu.pipeline_mode<synchronous>, transform_indices = @transform_5, window_bounds = array<i64: 8, 16>}, {pipeline_mode = #tpu.pipeline_mode<synchronous>, transform_indices = @transform_6, window_bounds = array<i64: 16, 16>}, {pipeline_mode = #tpu.pipeline_mode<synchronous>, transform_indices = @transform_7, window_bounds = array<i64: 16, 128>}, {pipeline_mode = #tpu.pipeline_mode<synchronous>, transform_indices = @transform_8, window_bounds = array<i64: 16, 128>}, {pipeline_mode = #tpu.pipeline_mode<synchronous>, transform_indices = @transform_9, window_bounds = array<i64: 32, 128>}, {pipeline_mode = #tpu.pipeline_mode<synchronous>, transform_indices = @transform_10, window_bounds = array<i64: 1, 128>}, {pipeline_mode = #tpu.pipeline_mode<synchronous>, transform_indices = @transform_11, window_bounds = array<i64: 32, 16>}, {pipeline_mode = #tpu.pipeline_mode<synchronous>, transform_indices = @transform_12, window_bounds = array<i64: 16, 16>}, {pipeline_mode = #tpu.pipeline_mode<synchronous>, transform_indices = @transform_13, window_bounds = array<i64: 1, 16>}, {pipeline_mode = #tpu.pipeline_mode<synchronous>, transform_indices = @transform_14, window_bounds = array<i64: 6, 16>}, {pipeline_mode = #tpu.pipeline_mode<synchronous>, transform_indices = @transform_15, window_bounds = array<i64: 16, 32>}, {pipeline_mode = #tpu.pipeline_mode<synchronous>, transform_indices = @transform_16, window_bounds = array<i64: 1, 32>}, {pipeline_mode = #tpu.pipeline_mode<synchronous>, transform_indices = @transform_17, window_bounds = array<i64: 32, 32>}, {pipeline_mode = #tpu.pipeline_mode<synchronous>, transform_indices = @transform_18, window_bounds = array<i64: 1, 32>}, {pipeline_mode = #tpu.pipeline_mode<synchronous>, transform_indices = @transform_19, window_bounds = array<i64: 32, 16>}, {pipeline_mode = #tpu.pipeline_mode<synchronous>, transform_indices = @transform_20, window_bounds = array<i64: 1, 16>}, {pipeline_mode = #tpu.pipeline_mode<synchronous>, transform_indices = @transform_21, window_bounds = array<i64: 32, 128>}, {pipeline_mode = #tpu.pipeline_mode<synchronous>, transform_indices = @transform_22, window_bounds = array<i64: 16, 128>}, {pipeline_mode = #tpu.pipeline_mode<synchronous>, transform_indices = @transform_23, window_bounds = array<i64: 32, 128>}, {pipeline_mode = #tpu.pipeline_mode<synchronous>, transform_indices = @transform_24, window_bounds = array<i64: 1, 128>}, {pipeline_mode = #tpu.pipeline_mode<synchronous>, transform_indices = @transform_25, window_bounds = array<i64: 32, 8>}, {pipeline_mode = #tpu.pipeline_mode<synchronous>, transform_indices = @transform_26, window_bounds = array<i64: 16, 8>}, {pipeline_mode = #tpu.pipeline_mode<synchronous>, transform_indices = @transform_27, window_bounds = array<i64: 1, 8>}, {pipeline_mode = #tpu.pipeline_mode<synchronous>, transform_indices = @transform_28, window_bounds = array<i64: 1, 32>}, {pipeline_mode = #tpu.pipeline_mode<synchronous>, transform_indices = @transform_29, window_bounds = array<i64: 1, 16>}, {pipeline_mode = #tpu.pipeline_mode<synchronous>, transform_indices = @transform_30, window_bounds = array<i64: 1, 1>}, {transform_indices = @transform_31, window_bounds = array<i64: 1, 2, 8>}, {transform_indices = @transform_32, window_bounds = array<i64: 1, 2, 1>}, {transform_indices = @transform_33, window_bounds = array<i64: 1, 2, 8>}]} {
    %c0_i32 = arith.constant 0 : i32
    %0 = arith.cmpi eq, %arg0, %c0_i32 : i32
    %1 = arith.extui %0 : i1 to i32
    %c0_i32_0 = arith.constant 0 : i32
    %2 = arith.cmpi ne, %1, %c0_i32_0 : i32
    scf.if %2 {
      %cst_165 = arith.constant 0.000000e+00 : f32
      %308 = vector.broadcast %cst_165 : f32 to vector<2x32xf32>
      %c0_166 = arith.constant 0 : index
      %c0_167 = arith.constant 0 : index
      %309 = vector.load %arg36[%c0_166, %c0_167] : memref<2x32xf32, #tpu.memory_space<vmem>>, vector<2x32xf32>
      tpu.vector_store %arg36[%c0_166, %c0_167], %308 {strides = array<i32>} : memref<2x32xf32, #tpu.memory_space<vmem>>, vector<2x32xf32>,
      %cst_168 = arith.constant 0.000000e+00 : f32
      %310 = vector.broadcast %cst_168 : f32 to vector<2x32xf32>
      %c0_169 = arith.constant 0 : index
      %c0_170 = arith.constant 0 : index
      %311 = vector.load %arg37[%c0_169, %c0_170] : memref<2x32xf32, #tpu.memory_space<vmem>>, vector<2x32xf32>
      tpu.vector_store %arg37[%c0_169, %c0_170], %310 {strides = array<i32>} : memref<2x32xf32, #tpu.memory_space<vmem>>, vector<2x32xf32>,
      %cst_171 = arith.constant 0.000000e+00 : f32
      %312 = vector.broadcast %cst_171 : f32 to vector<2x32xf32>
      %c0_172 = arith.constant 0 : index
      %c0_173 = arith.constant 0 : index
      %313 = vector.load %arg38[%c0_172, %c0_173] : memref<2x32xf32, #tpu.memory_space<vmem>>, vector<2x32xf32>
      tpu.vector_store %arg38[%c0_172, %c0_173], %312 {strides = array<i32>} : memref<2x32xf32, #tpu.memory_space<vmem>>, vector<2x32xf32>,
      %cst_174 = arith.constant 0.000000e+00 : f32
      %314 = vector.broadcast %cst_174 : f32 to vector<2x32xf32>
      %c0_175 = arith.constant 0 : index
      %c0_176 = arith.constant 0 : index
      %315 = vector.load %arg39[%c0_175, %c0_176] : memref<2x32xf32, #tpu.memory_space<vmem>>, vector<2x32xf32>
      tpu.vector_store %arg39[%c0_175, %c0_176], %314 {strides = array<i32>} : memref<2x32xf32, #tpu.memory_space<vmem>>, vector<2x32xf32>,
      %cst_177 = arith.constant 0.000000e+00 : f32
      %316 = vector.broadcast %cst_177 : f32 to vector<2x16xf32>
      %c0_178 = arith.constant 0 : index
      %c0_179 = arith.constant 0 : index
      %317 = vector.load %arg40[%c0_178, %c0_179] : memref<2x16xf32, #tpu.memory_space<vmem>>, vector<2x16xf32>
      tpu.vector_store %arg40[%c0_178, %c0_179], %316 {strides = array<i32>} : memref<2x16xf32, #tpu.memory_space<vmem>>, vector<2x16xf32>,
      %cst_180 = arith.constant 0.000000e+00 : f32
      %318 = vector.broadcast %cst_180 : f32 to vector<2x8xf32>
      %c0_181 = arith.constant 0 : index
      %c0_182 = arith.constant 0 : index
      %319 = vector.load %arg41[%c0_181, %c0_182] : memref<2x8xf32, #tpu.memory_space<vmem>>, vector<2x8xf32>
      tpu.vector_store %arg41[%c0_181, %c0_182], %318 {strides = array<i32>} : memref<2x8xf32, #tpu.memory_space<vmem>>, vector<2x8xf32>,
      %cst_183 = arith.constant 0.000000e+00 : f32
      %320 = vector.broadcast %cst_183 : f32 to vector<2x8xf32>
      %c0_184 = arith.constant 0 : index
      %c0_185 = arith.constant 0 : index
      %321 = vector.load %arg42[%c0_184, %c0_185] : memref<2x8xf32, #tpu.memory_space<vmem>>, vector<2x8xf32>
      tpu.vector_store %arg42[%c0_184, %c0_185], %320 {strides = array<i32>} : memref<2x8xf32, #tpu.memory_space<vmem>>, vector<2x8xf32>,
      %cst_186 = arith.constant 0.000000e+00 : f32
      %322 = vector.broadcast %cst_186 : f32 to vector<2x8x16xf32>
      %c0_187 = arith.constant 0 : index
      %c0_188 = arith.constant 0 : index
      %c0_189 = arith.constant 0 : index
      %323 = vector.load %arg43[%c0_187, %c0_188, %c0_189] : memref<2x8x16xf32, #tpu.memory_space<vmem>>, vector<2x8x16xf32>
      tpu.vector_store %arg43[%c0_187, %c0_188, %c0_189], %322 {strides = array<i32>} : memref<2x8x16xf32, #tpu.memory_space<vmem>>, vector<2x8x16xf32>,
      %cst_190 = arith.constant 0.000000e+00 : f32
      %324 = vector.broadcast %cst_190 : f32 to vector<2x8x16xf32>
      %c0_191 = arith.constant 0 : index
      %c0_192 = arith.constant 0 : index
      %c0_193 = arith.constant 0 : index
      %325 = vector.load %arg44[%c0_191, %c0_192, %c0_193] : memref<2x8x16xf32, #tpu.memory_space<vmem>>, vector<2x8x16xf32>
      tpu.vector_store %arg44[%c0_191, %c0_192, %c0_193], %324 {strides = array<i32>} : memref<2x8x16xf32, #tpu.memory_space<vmem>>, vector<2x8x16xf32>,
      %cst_194 = arith.constant 0.000000e+00 : f32
      %326 = vector.broadcast %cst_194 : f32 to vector<2x8xf32>
      %c0_195 = arith.constant 0 : index
      %c0_196 = arith.constant 0 : index
      %327 = vector.load %arg45[%c0_195, %c0_196] : memref<2x8xf32, #tpu.memory_space<vmem>>, vector<2x8xf32>
      tpu.vector_store %arg45[%c0_195, %c0_196], %326 {strides = array<i32>} : memref<2x8xf32, #tpu.memory_space<vmem>>, vector<2x8xf32>,
    } else {
    }
    %c0 = arith.constant 0 : index
    %c0_1 = arith.constant 0 : index
    %c0_2 = arith.constant 0 : index
    %3 = vector.load %arg2[%c0, %c0_1, %c0_2] : memref<1x2x16xf32, #tpu.memory_space<vmem>>, vector<1x2x16xf32>
    %4 = vector.shape_cast %3 : vector<1x2x16xf32> to vector<2x16xf32>
    %c0_3 = arith.constant 0 : index
    %c0_4 = arith.constant 0 : index
    %c0_5 = arith.constant 0 : index
    %5 = vector.load %arg5[%c0_3, %c0_4, %c0_5] : memref<1x2x32xf32, #tpu.memory_space<vmem>>, vector<1x2x32xf32>
    %6 = vector.shape_cast %5 : vector<1x2x32xf32> to vector<2x32xf32>
    %c0_6 = arith.constant 0 : index
    %c0_7 = arith.constant 0 : index
    %7 = vector.load %arg45[%c0_6, %c0_7] : memref<2x8xf32, #tpu.memory_space<vmem>>, vector<2x8xf32>
    %c0_8 = arith.constant 0 : index
    %c0_9 = arith.constant 0 : index
    %8 = vector.load %arg7[%c0_8, %c0_9] : memref<8x16xf32, #tpu.memory_space<vmem>>, vector<8x16xf32>
    %cst = arith.constant dense<0.000000e+00> : vector<2x16xf32>
    %9 = tpu.matmul %7, %8, %cst {dimension_numbers = #tpu.dot_dimension_numbers<[1], [0], [0], [1], [0, 0, 1, 1], [], []>} : vector<2x8xf32>, vector<8x16xf32>, vector<2x16xf32> -> vector<2x16xf32>
    %cst_10 = arith.constant 0.000000e+00 : f32
    %10 = vector.broadcast %cst_10 : f32 to vector<2x16xf32>
    %11 = arith.maximumf %9, %10 : vector<2x16xf32>
    %12 = vector.extract_strided_slice %6 {offsets = [0, 0], sizes = [2, 16], strides = [1, 1]} : vector<2x32xf32> to vector<2x16xf32>
    %13 = arith.mulf %11, %12 : vector<2x16xf32>
    %c0_11 = arith.constant 0 : index
    %c0_12 = arith.constant 0 : index
    %14 = vector.load %arg8[%c0_11, %c0_12] : memref<16x16xf32, #tpu.memory_space<vmem>>, vector<16x16xf32>
    %cst_13 = arith.constant dense<0.000000e+00> : vector<2x16xf32>
    %15 = tpu.matmul %13, %14, %cst_13 {dimension_numbers = #tpu.dot_dimension_numbers<[1], [0], [0], [1], [0, 0, 1, 1], [], []>} : vector<2x16xf32>, vector<16x16xf32>, vector<2x16xf32> -> vector<2x16xf32>
    %cst_14 = arith.constant 0.000000e+00 : f32
    %16 = vector.broadcast %cst_14 : f32 to vector<2x16xf32>
    %17 = arith.maximumf %15, %16 : vector<2x16xf32>
    %18 = vector.extract_strided_slice %6 {offsets = [0, 16], sizes = [2, 16], strides = [1, 1]} : vector<2x32xf32> to vector<2x16xf32>
    %19 = arith.mulf %17, %18 : vector<2x16xf32>
    %20 = arith.index_cast %arg0 : i32 to index
    %21 = memref.load %arg1[%20] : memref<8xi32, #tpu.memory_space<smem>>
    %c0_i32_15 = arith.constant 0 : i32
    %22 = arith.cmpi sgt, %21, %c0_i32_15 : i32
    %23 = arith.extui %22 : i1 to i32
    %24 = arith.sitofp %23 : i32 to f32
    %25 = vector.broadcast %24 : f32 to vector<2x16xf32>
    %26 = arith.mulf %25, %19 : vector<2x16xf32>
    %cst_16 = arith.constant 1.000000e+00 : f32
    %27 = arith.subf %cst_16, %24 : f32
    %28 = vector.broadcast %27 : f32 to vector<2x16xf32>
    %29 = arith.mulf %28, %4 : vector<2x16xf32>
    %30 = arith.addf %26, %29 : vector<2x16xf32>
    %c0_17 = arith.constant 0 : index
    %c0_18 = arith.constant 0 : index
    %c0_19 = arith.constant 0 : index
    %31 = vector.load %arg3[%c0_17, %c0_18, %c0_19] : memref<1x2x64xf32, #tpu.memory_space<vmem>>, vector<1x2x64xf32>
    %32 = vector.shape_cast %31 : vector<1x2x64xf32> to vector<2x64xf32>
    %c0_20 = arith.constant 0 : index
    %c0_21 = arith.constant 0 : index
    %33 = vector.load %arg9[%c0_20, %c0_21] : memref<16x128xf32, #tpu.memory_space<vmem>>, vector<16x128xf32>
    %cst_22 = arith.constant dense<0.000000e+00> : vector<2x128xf32>
    %34 = tpu.matmul %30, %33, %cst_22 {dimension_numbers = #tpu.dot_dimension_numbers<[1], [0], [0], [1], [0, 0, 1, 1], [], []>} : vector<2x16xf32>, vector<16x128xf32>, vector<2x128xf32> -> vector<2x128xf32>
    %c0_23 = arith.constant 0 : index
    %c0_24 = arith.constant 0 : index
    %35 = vector.load %arg40[%c0_23, %c0_24] : memref<2x16xf32, #tpu.memory_space<vmem>>, vector<2x16xf32>
    %c0_25 = arith.constant 0 : index
    %c0_26 = arith.constant 0 : index
    %36 = vector.load %arg10[%c0_25, %c0_26] : memref<16x128xf32, #tpu.memory_space<vmem>>, vector<16x128xf32>
    %cst_27 = arith.constant dense<0.000000e+00> : vector<2x128xf32>
    %37 = tpu.matmul %35, %36, %cst_27 {dimension_numbers = #tpu.dot_dimension_numbers<[1], [0], [0], [1], [0, 0, 1, 1], [], []>} : vector<2x16xf32>, vector<16x128xf32>, vector<2x128xf32> -> vector<2x128xf32>
    %38 = arith.addf %34, %37 : vector<2x128xf32>
    %c0_28 = arith.constant 0 : index
    %c0_29 = arith.constant 0 : index
    %39 = vector.load %arg36[%c0_28, %c0_29] : memref<2x32xf32, #tpu.memory_space<vmem>>, vector<2x32xf32>
    %c0_30 = arith.constant 0 : index
    %c0_31 = arith.constant 0 : index
    %40 = vector.load %arg11[%c0_30, %c0_31] : memref<32x128xf32, #tpu.memory_space<vmem>>, vector<32x128xf32>
    %cst_32 = arith.constant dense<0.000000e+00> : vector<2x128xf32>
    %41 = tpu.matmul %39, %40, %cst_32 {dimension_numbers = #tpu.dot_dimension_numbers<[1], [0], [0], [1], [0, 0, 1, 1], [], []>} : vector<2x32xf32>, vector<32x128xf32>, vector<2x128xf32> -> vector<2x128xf32>
    %42 = arith.addf %38, %41 : vector<2x128xf32>
    %c0_33 = arith.constant 0 : index
    %c0_34 = arith.constant 0 : index
    %43 = vector.load %arg12[%c0_33, %c0_34] : memref<1x128xf32, #tpu.memory_space<vmem>>, vector<1x128xf32>
    %44 = vector.broadcast %43 : vector<1x128xf32> to vector<2x128xf32>
    %45 = arith.addf %42, %44 : vector<2x128xf32>
    %c0_35 = arith.constant 0 : index
    %c0_36 = arith.constant 0 : index
    %46 = vector.load %arg37[%c0_35, %c0_36] : memref<2x32xf32, #tpu.memory_space<vmem>>, vector<2x32xf32>
    %47 = vector.extract_strided_slice %45 {offsets = [0, 0], sizes = [2, 32], strides = [1, 1]} : vector<2x128xf32> to vector<2x32xf32>
    %48 = arith.negf %47 : vector<2x32xf32>
    %49 = math.exp %48 : vector<2x32xf32>
    %cst_37 = arith.constant 1.000000e+00 : f32
    %50 = vector.broadcast %cst_37 : f32 to vector<2x32xf32>
    %51 = arith.addf %50, %49 : vector<2x32xf32>
    %52 = arith.divf %50, %51 : vector<2x32xf32>
    %53 = vector.extract_strided_slice %45 {offsets = [0, 32], sizes = [2, 32], strides = [1, 1]} : vector<2x128xf32> to vector<2x32xf32>
    %54 = arith.negf %53 : vector<2x32xf32>
    %55 = math.exp %54 : vector<2x32xf32>
    %cst_38 = arith.constant 1.000000e+00 : f32
    %56 = vector.broadcast %cst_38 : f32 to vector<2x32xf32>
    %57 = arith.addf %56, %55 : vector<2x32xf32>
    %58 = arith.divf %56, %57 : vector<2x32xf32>
    %59 = vector.extract_strided_slice %45 {offsets = [0, 64], sizes = [2, 32], strides = [1, 1]} : vector<2x128xf32> to vector<2x32xf32>
    %60 = math.tanh %59 : vector<2x32xf32>
    %61 = vector.extract_strided_slice %45 {offsets = [0, 96], sizes = [2, 32], strides = [1, 1]} : vector<2x128xf32> to vector<2x32xf32>
    %62 = arith.negf %61 : vector<2x32xf32>
    %63 = math.exp %62 : vector<2x32xf32>
    %cst_39 = arith.constant 1.000000e+00 : f32
    %64 = vector.broadcast %cst_39 : f32 to vector<2x32xf32>
    %65 = arith.addf %64, %63 : vector<2x32xf32>
    %66 = arith.divf %64, %65 : vector<2x32xf32>
    %67 = arith.mulf %58, %46 : vector<2x32xf32>
    %68 = arith.mulf %52, %60 : vector<2x32xf32>
    %69 = arith.addf %67, %68 : vector<2x32xf32>
    %70 = math.tanh %69 : vector<2x32xf32>
    %71 = arith.mulf %66, %70 : vector<2x32xf32>
    %72 = vector.extract_strided_slice %32 {offsets = [0, 0], sizes = [2, 32], strides = [1, 1]} : vector<2x64xf32> to vector<2x32xf32>
    %73 = arith.mulf %71, %72 : vector<2x32xf32>
    %74 = vector.extract_strided_slice %32 {offsets = [0, 32], sizes = [2, 32], strides = [1, 1]} : vector<2x64xf32> to vector<2x32xf32>
    %75 = arith.mulf %69, %74 : vector<2x32xf32>
    %c0_40 = arith.constant 0 : index
    %c0_41 = arith.constant 0 : index
    %76 = vector.load %arg36[%c0_40, %c0_41] : memref<2x32xf32, #tpu.memory_space<vmem>>, vector<2x32xf32>
    tpu.vector_store %arg36[%c0_40, %c0_41], %73 {strides = array<i32>} : memref<2x32xf32, #tpu.memory_space<vmem>>, vector<2x32xf32>,
    %c0_42 = arith.constant 0 : index
    %c0_43 = arith.constant 0 : index
    %77 = vector.load %arg37[%c0_42, %c0_43] : memref<2x32xf32, #tpu.memory_space<vmem>>, vector<2x32xf32>
    tpu.vector_store %arg37[%c0_42, %c0_43], %75 {strides = array<i32>} : memref<2x32xf32, #tpu.memory_space<vmem>>, vector<2x32xf32>,
    %78 = tpu.iota {dimensions = array<i32: 0>} : vector<8x8xi32>
    %79 = tpu.iota {dimensions = array<i32: 1>} : vector<8x8xi32>
    %80 = tpu.iota {dimensions = array<i32: 1>} : vector<2x8xi32>
    %c0_44 = arith.constant 0 : index
    %c0_45 = arith.constant 0 : index
    %81 = vector.load %arg16[%c0_44, %c0_45] : memref<6x16xf32, #tpu.memory_space<vmem>>, vector<6x16xf32>
    %c0_46 = arith.constant 0 : index
    %c0_47 = arith.constant 0 : index
    %82 = vector.load %arg41[%c0_46, %c0_47] : memref<2x8xf32, #tpu.memory_space<vmem>>, vector<2x8xf32>
    %c0_48 = arith.constant 0 : index
    %c0_49 = arith.constant 0 : index
    %83 = vector.load %arg42[%c0_48, %c0_49] : memref<2x8xf32, #tpu.memory_space<vmem>>, vector<2x8xf32>
    %cst_50 = arith.constant 0.000000e+00 : f32
    %84 = vector.broadcast %cst_50 : f32 to vector<2x8x16xf32>
    %c-2_i32 = arith.constant -2 : i32
    %85 = vector.broadcast %c-2_i32 : i32 to vector<8x8xi32>
    %86 = arith.addi %79, %85 : vector<8x8xi32>
    %87 = arith.cmpi eq, %78, %86 : vector<8x8xi32>
    %88 = arith.extui %87 : vector<8x8xi1> to vector<8x8xi32>
    %89 = arith.sitofp %88 : vector<8x8xi32> to vector<8x8xf32>
    %cst_51 = arith.constant dense<0.000000e+00> : vector<2x8xf32>
    %90 = tpu.matmul %82, %89, %cst_51 {dimension_numbers = #tpu.dot_dimension_numbers<[1], [0], [0], [1], [0, 0, 1, 1], [], []>} : vector<2x8xf32>, vector<8x8xf32>, vector<2x8xf32> -> vector<2x8xf32>
    %91 = vector.extract_strided_slice %81 {offsets = [0, 0], sizes = [1, 16], strides = [1, 1]} : vector<6x16xf32> to vector<1x16xf32>
    %92 = vector.shape_cast %90 : vector<2x8xf32> to vector<2x8x1xf32>
    %93 = vector.shape_cast %91 : vector<1x16xf32> to vector<1x1x16xf32>
    %94 = vector.broadcast %92 : vector<2x8x1xf32> to vector<2x8x16xf32>
    %95 = vector.broadcast %93 : vector<1x1x16xf32> to vector<2x8x16xf32>
    %96 = arith.mulf %94, %95 : vector<2x8x16xf32>
    %97 = arith.addf %84, %96 : vector<2x8x16xf32>
    %c-1_i32 = arith.constant -1 : i32
    %98 = vector.broadcast %c-1_i32 : i32 to vector<8x8xi32>
    %99 = arith.addi %79, %98 : vector<8x8xi32>
    %100 = arith.cmpi eq, %78, %99 : vector<8x8xi32>
    %101 = arith.extui %100 : vector<8x8xi1> to vector<8x8xi32>
    %102 = arith.sitofp %101 : vector<8x8xi32> to vector<8x8xf32>
    %cst_52 = arith.constant dense<0.000000e+00> : vector<2x8xf32>
    %103 = tpu.matmul %82, %102, %cst_52 {dimension_numbers = #tpu.dot_dimension_numbers<[1], [0], [0], [1], [0, 0, 1, 1], [], []>} : vector<2x8xf32>, vector<8x8xf32>, vector<2x8xf32> -> vector<2x8xf32>
    %104 = vector.extract_strided_slice %81 {offsets = [1, 0], sizes = [1, 16], strides = [1, 1]} : vector<6x16xf32> to vector<1x16xf32>
    %105 = vector.shape_cast %103 : vector<2x8xf32> to vector<2x8x1xf32>
    %106 = vector.shape_cast %104 : vector<1x16xf32> to vector<1x1x16xf32>
    %107 = vector.broadcast %105 : vector<2x8x1xf32> to vector<2x8x16xf32>
    %108 = vector.broadcast %106 : vector<1x1x16xf32> to vector<2x8x16xf32>
    %109 = arith.mulf %107, %108 : vector<2x8x16xf32>
    %110 = arith.addf %97, %109 : vector<2x8x16xf32>
    %111 = vector.extract_strided_slice %81 {offsets = [2, 0], sizes = [1, 16], strides = [1, 1]} : vector<6x16xf32> to vector<1x16xf32>
    %112 = vector.shape_cast %82 : vector<2x8xf32> to vector<2x8x1xf32>
    %113 = vector.shape_cast %111 : vector<1x16xf32> to vector<1x1x16xf32>
    %114 = vector.broadcast %112 : vector<2x8x1xf32> to vector<2x8x16xf32>
    %115 = vector.broadcast %113 : vector<1x1x16xf32> to vector<2x8x16xf32>
    %116 = arith.mulf %114, %115 : vector<2x8x16xf32>
    %117 = arith.addf %110, %116 : vector<2x8x16xf32>
    %c-2_i32_53 = arith.constant -2 : i32
    %118 = vector.broadcast %c-2_i32_53 : i32 to vector<8x8xi32>
    %119 = arith.addi %79, %118 : vector<8x8xi32>
    %120 = arith.cmpi eq, %78, %119 : vector<8x8xi32>
    %121 = arith.extui %120 : vector<8x8xi1> to vector<8x8xi32>
    %122 = arith.sitofp %121 : vector<8x8xi32> to vector<8x8xf32>
    %cst_54 = arith.constant dense<0.000000e+00> : vector<2x8xf32>
    %123 = tpu.matmul %83, %122, %cst_54 {dimension_numbers = #tpu.dot_dimension_numbers<[1], [0], [0], [1], [0, 0, 1, 1], [], []>} : vector<2x8xf32>, vector<8x8xf32>, vector<2x8xf32> -> vector<2x8xf32>
    %124 = vector.extract_strided_slice %81 {offsets = [3, 0], sizes = [1, 16], strides = [1, 1]} : vector<6x16xf32> to vector<1x16xf32>
    %125 = vector.shape_cast %123 : vector<2x8xf32> to vector<2x8x1xf32>
    %126 = vector.shape_cast %124 : vector<1x16xf32> to vector<1x1x16xf32>
    %127 = vector.broadcast %125 : vector<2x8x1xf32> to vector<2x8x16xf32>
    %128 = vector.broadcast %126 : vector<1x1x16xf32> to vector<2x8x16xf32>
    %129 = arith.mulf %127, %128 : vector<2x8x16xf32>
    %130 = arith.addf %117, %129 : vector<2x8x16xf32>
    %c-1_i32_55 = arith.constant -1 : i32
    %131 = vector.broadcast %c-1_i32_55 : i32 to vector<8x8xi32>
    %132 = arith.addi %79, %131 : vector<8x8xi32>
    %133 = arith.cmpi eq, %78, %132 : vector<8x8xi32>
    %134 = arith.extui %133 : vector<8x8xi1> to vector<8x8xi32>
    %135 = arith.sitofp %134 : vector<8x8xi32> to vector<8x8xf32>
    %cst_56 = arith.constant dense<0.000000e+00> : vector<2x8xf32>
    %136 = tpu.matmul %83, %135, %cst_56 {dimension_numbers = #tpu.dot_dimension_numbers<[1], [0], [0], [1], [0, 0, 1, 1], [], []>} : vector<2x8xf32>, vector<8x8xf32>, vector<2x8xf32> -> vector<2x8xf32>
    %137 = vector.extract_strided_slice %81 {offsets = [4, 0], sizes = [1, 16], strides = [1, 1]} : vector<6x16xf32> to vector<1x16xf32>
    %138 = vector.shape_cast %136 : vector<2x8xf32> to vector<2x8x1xf32>
    %139 = vector.shape_cast %137 : vector<1x16xf32> to vector<1x1x16xf32>
    %140 = vector.broadcast %138 : vector<2x8x1xf32> to vector<2x8x16xf32>
    %141 = vector.broadcast %139 : vector<1x1x16xf32> to vector<2x8x16xf32>
    %142 = arith.mulf %140, %141 : vector<2x8x16xf32>
    %143 = arith.addf %130, %142 : vector<2x8x16xf32>
    %144 = vector.extract_strided_slice %81 {offsets = [5, 0], sizes = [1, 16], strides = [1, 1]} : vector<6x16xf32> to vector<1x16xf32>
    %145 = vector.shape_cast %83 : vector<2x8xf32> to vector<2x8x1xf32>
    %146 = vector.shape_cast %144 : vector<1x16xf32> to vector<1x1x16xf32>
    %147 = vector.broadcast %145 : vector<2x8x1xf32> to vector<2x8x16xf32>
    %148 = vector.broadcast %146 : vector<1x1x16xf32> to vector<2x8x16xf32>
    %149 = arith.mulf %147, %148 : vector<2x8x16xf32>
    %150 = arith.addf %143, %149 : vector<2x8x16xf32>
    %c0_57 = arith.constant 0 : index
    %c0_58 = arith.constant 0 : index
    %151 = vector.load %arg13[%c0_57, %c0_58] : memref<32x16xf32, #tpu.memory_space<vmem>>, vector<32x16xf32>
    %cst_59 = arith.constant dense<0.000000e+00> : vector<2x16xf32>
    %152 = tpu.matmul %73, %151, %cst_59 {dimension_numbers = #tpu.dot_dimension_numbers<[1], [0], [0], [1], [0, 0, 1, 1], [], []>} : vector<2x32xf32>, vector<32x16xf32>, vector<2x16xf32> -> vector<2x16xf32>
    %153 = vector.shape_cast %152 : vector<2x16xf32> to vector<2x1x16xf32>
    %154 = vector.broadcast %153 : vector<2x1x16xf32> to vector<2x8x16xf32>
    %155 = arith.addf %154, %150 : vector<2x8x16xf32>
    %c0_60 = arith.constant 0 : index
    %c0_61 = arith.constant 0 : index
    %c0_62 = arith.constant 0 : index
    %156 = vector.load %arg44[%c0_60, %c0_61, %c0_62] : memref<2x8x16xf32, #tpu.memory_space<vmem>>, vector<2x8x16xf32>
    %157 = arith.addf %155, %156 : vector<2x8x16xf32>
    %158 = math.tanh %157 : vector<2x8x16xf32>
    %c0_63 = arith.constant 0 : index
    %c0_64 = arith.constant 0 : index
    %159 = vector.load %arg15[%c0_63, %c0_64] : memref<1x16xf32, #tpu.memory_space<vmem>>, vector<1x16xf32>
    %160 = vector.shape_cast %159 : vector<1x16xf32> to vector<1x1x16xf32>
    %161 = vector.broadcast %160 : vector<1x1x16xf32> to vector<2x8x16xf32>
    %162 = arith.mulf %158, %161 : vector<2x8x16xf32>
    %cst_65 = arith.constant dense<0.000000e+00> : vector<2x8xf32>
    %163 = vector.multi_reduction <add>, %162, %cst_65 [2] : vector<2x8x16xf32> to vector<2x8xf32>
    %c0_66 = arith.constant 0 : index
    %c0_67 = arith.constant 0 : index
    %164 = vector.load %arg6[%c0_66, %c0_67] : memref<2x8xf32, #tpu.memory_space<vmem>>, vector<2x8xf32>
    %165 = arith.addf %163, %164 : vector<2x8xf32>
    %166 = vector.broadcast %arg0 : i32 to vector<2x8xi32>
    %167 = arith.cmpi sle, %80, %166 : vector<2x8xi32>
    %cst_68 = arith.constant 0xFF800000 : f32
    %168 = vector.broadcast %cst_68 : f32 to vector<2x8xf32>
    %169 = arith.select %167, %165, %168 : vector<2x8xi1>, vector<2x8xf32>
    %cst_69 = arith.constant dense<0xFF800000> : vector<2xf32>
    %170 = vector.multi_reduction <maximumf>, %169, %cst_69 [1] : vector<2x8xf32> to vector<2xf32>
    %171 = vector.shape_cast %170 : vector<2xf32> to vector<2x1xf32>
    %172 = vector.broadcast %171 : vector<2x1xf32> to vector<2x8xf32>
    %173 = arith.subf %169, %172 : vector<2x8xf32>
    %174 = math.exp %173 : vector<2x8xf32>
    %cst_70 = arith.constant dense<0.000000e+00> : vector<2xf32>
    %175 = vector.multi_reduction <add>, %174, %cst_70 [1] : vector<2x8xf32> to vector<2xf32>
    %176 = vector.shape_cast %175 : vector<2xf32> to vector<2x1xf32>
    %177 = vector.broadcast %176 : vector<2x1xf32> to vector<2x8xf32>
    %178 = arith.divf %174, %177 : vector<2x8xf32>
    %179 = vector.shape_cast %178 : vector<2x8xf32> to vector<2x8x1xf32>
    %c0_71 = arith.constant 0 : index
    %c0_72 = arith.constant 0 : index
    %c0_73 = arith.constant 0 : index
    %180 = vector.load %arg43[%c0_71, %c0_72, %c0_73] : memref<2x8x16xf32, #tpu.memory_space<vmem>>, vector<2x8x16xf32>
    %181 = vector.broadcast %179 : vector<2x8x1xf32> to vector<2x8x16xf32>
    %182 = arith.mulf %181, %180 : vector<2x8x16xf32>
    %cst_74 = arith.constant dense<0.000000e+00> : vector<2x16xf32>
    %183 = vector.multi_reduction <add>, %182, %cst_74 [1] : vector<2x8x16xf32> to vector<2x16xf32>
    %c0_75 = arith.constant 0 : index
    %c0_76 = arith.constant 0 : index
    %184 = vector.load %arg41[%c0_75, %c0_76] : memref<2x8xf32, #tpu.memory_space<vmem>>, vector<2x8xf32>
    tpu.vector_store %arg41[%c0_75, %c0_76], %178 {strides = array<i32>} : memref<2x8xf32, #tpu.memory_space<vmem>>, vector<2x8xf32>,
    %185 = arith.addf %83, %178 : vector<2x8xf32>
    %c0_77 = arith.constant 0 : index
    %c0_78 = arith.constant 0 : index
    %186 = vector.load %arg42[%c0_77, %c0_78] : memref<2x8xf32, #tpu.memory_space<vmem>>, vector<2x8xf32>
    tpu.vector_store %arg42[%c0_77, %c0_78], %185 {strides = array<i32>} : memref<2x8xf32, #tpu.memory_space<vmem>>, vector<2x8xf32>,
    %c0_79 = arith.constant 0 : index
    %c0_80 = arith.constant 0 : index
    %187 = vector.load %arg17[%c0_79, %c0_80] : memref<16x32xf32, #tpu.memory_space<vmem>>, vector<16x32xf32>
    %cst_81 = arith.constant dense<0.000000e+00> : vector<2x32xf32>
    %188 = tpu.matmul %183, %187, %cst_81 {dimension_numbers = #tpu.dot_dimension_numbers<[1], [0], [0], [1], [0, 0, 1, 1], [], []>} : vector<2x16xf32>, vector<16x32xf32>, vector<2x32xf32> -> vector<2x32xf32>
    %c0_82 = arith.constant 0 : index
    %c0_83 = arith.constant 0 : index
    %189 = vector.load %arg18[%c0_82, %c0_83] : memref<1x32xf32, #tpu.memory_space<vmem>>, vector<1x32xf32>
    %190 = vector.broadcast %189 : vector<1x32xf32> to vector<2x32xf32>
    %191 = arith.addf %188, %190 : vector<2x32xf32>
    %cst_84 = arith.constant 0.000000e+00 : f32
    %192 = vector.broadcast %cst_84 : f32 to vector<2x32xf32>
    %193 = arith.maximumf %191, %192 : vector<2x32xf32>
    %c0_85 = arith.constant 0 : index
    %c0_86 = arith.constant 0 : index
    %194 = vector.load %arg19[%c0_85, %c0_86] : memref<32x32xf32, #tpu.memory_space<vmem>>, vector<32x32xf32>
    %cst_87 = arith.constant dense<0.000000e+00> : vector<2x32xf32>
    %195 = tpu.matmul %193, %194, %cst_87 {dimension_numbers = #tpu.dot_dimension_numbers<[1], [0], [0], [1], [0, 0, 1, 1], [], []>} : vector<2x32xf32>, vector<32x32xf32>, vector<2x32xf32> -> vector<2x32xf32>
    %c0_88 = arith.constant 0 : index
    %c0_89 = arith.constant 0 : index
    %196 = vector.load %arg20[%c0_88, %c0_89] : memref<1x32xf32, #tpu.memory_space<vmem>>, vector<1x32xf32>
    %197 = vector.broadcast %196 : vector<1x32xf32> to vector<2x32xf32>
    %198 = arith.addf %195, %197 : vector<2x32xf32>
    %cst_90 = arith.constant 0.000000e+00 : f32
    %199 = vector.broadcast %cst_90 : f32 to vector<2x32xf32>
    %200 = arith.maximumf %198, %199 : vector<2x32xf32>
    %c0_91 = arith.constant 0 : index
    %c0_92 = arith.constant 0 : index
    %201 = vector.load %arg21[%c0_91, %c0_92] : memref<32x16xf32, #tpu.memory_space<vmem>>, vector<32x16xf32>
    %cst_93 = arith.constant dense<0.000000e+00> : vector<2x16xf32>
    %202 = tpu.matmul %200, %201, %cst_93 {dimension_numbers = #tpu.dot_dimension_numbers<[1], [0], [0], [1], [0, 0, 1, 1], [], []>} : vector<2x32xf32>, vector<32x16xf32>, vector<2x16xf32> -> vector<2x16xf32>
    %c0_94 = arith.constant 0 : index
    %c0_95 = arith.constant 0 : index
    %203 = vector.load %arg22[%c0_94, %c0_95] : memref<1x16xf32, #tpu.memory_space<vmem>>, vector<1x16xf32>
    %204 = vector.broadcast %203 : vector<1x16xf32> to vector<2x16xf32>
    %205 = arith.addf %202, %204 : vector<2x16xf32>
    %206 = arith.addf %183, %205 : vector<2x16xf32>
    %c0_96 = arith.constant 0 : index
    %c0_97 = arith.constant 0 : index
    %207 = vector.load %arg40[%c0_96, %c0_97] : memref<2x16xf32, #tpu.memory_space<vmem>>, vector<2x16xf32>
    tpu.vector_store %arg40[%c0_96, %c0_97], %206 {strides = array<i32>} : memref<2x16xf32, #tpu.memory_space<vmem>>, vector<2x16xf32>,
    %c0_98 = arith.constant 0 : index
    %c0_99 = arith.constant 0 : index
    %208 = vector.load %arg14[%c0_98, %c0_99] : memref<16x16xf32, #tpu.memory_space<vmem>>, vector<16x16xf32>
    %cst_100 = arith.constant dense<0.000000e+00> : vector<2x16xf32>
    %209 = tpu.matmul %206, %208, %cst_100 {dimension_numbers = #tpu.dot_dimension_numbers<[1], [0], [0], [1], [0, 0, 1, 1], [], []>} : vector<2x16xf32>, vector<16x16xf32>, vector<2x16xf32> -> vector<2x16xf32>
    %210 = tpu.iota {dimensions = array<i32: 1>} : vector<2x8x1xi32>
    %c1_i32 = arith.constant 1 : i32
    %211 = arith.addi %arg0, %c1_i32 : i32
    %212 = vector.broadcast %211 : i32 to vector<2x8x1xi32>
    %213 = arith.cmpi eq, %210, %212 : vector<2x8x1xi32>
    %214 = arith.extui %213 : vector<2x8x1xi1> to vector<2x8x1xi32>
    %215 = arith.sitofp %214 : vector<2x8x1xi32> to vector<2x8x1xf32>
    %c0_101 = arith.constant 0 : index
    %c0_102 = arith.constant 0 : index
    %c0_103 = arith.constant 0 : index
    %216 = vector.load %arg43[%c0_101, %c0_102, %c0_103] : memref<2x8x16xf32, #tpu.memory_space<vmem>>, vector<2x8x16xf32>
    %217 = vector.shape_cast %206 : vector<2x16xf32> to vector<2x1x16xf32>
    %218 = vector.broadcast %215 : vector<2x8x1xf32> to vector<2x8x16xf32>
    %219 = vector.broadcast %217 : vector<2x1x16xf32> to vector<2x8x16xf32>
    %220 = arith.mulf %218, %219 : vector<2x8x16xf32>
    %221 = arith.addf %216, %220 : vector<2x8x16xf32>
    %c0_104 = arith.constant 0 : index
    %c0_105 = arith.constant 0 : index
    %c0_106 = arith.constant 0 : index
    %222 = vector.load %arg43[%c0_104, %c0_105, %c0_106] : memref<2x8x16xf32, #tpu.memory_space<vmem>>, vector<2x8x16xf32>
    tpu.vector_store %arg43[%c0_104, %c0_105, %c0_106], %221 {strides = array<i32>} : memref<2x8x16xf32, #tpu.memory_space<vmem>>, vector<2x8x16xf32>,
    %c0_107 = arith.constant 0 : index
    %c0_108 = arith.constant 0 : index
    %c0_109 = arith.constant 0 : index
    %223 = vector.load %arg44[%c0_107, %c0_108, %c0_109] : memref<2x8x16xf32, #tpu.memory_space<vmem>>, vector<2x8x16xf32>
    %224 = vector.shape_cast %209 : vector<2x16xf32> to vector<2x1x16xf32>
    %225 = vector.broadcast %215 : vector<2x8x1xf32> to vector<2x8x16xf32>
    %226 = vector.broadcast %224 : vector<2x1x16xf32> to vector<2x8x16xf32>
    %227 = arith.mulf %225, %226 : vector<2x8x16xf32>
    %228 = arith.addf %223, %227 : vector<2x8x16xf32>
    %c0_110 = arith.constant 0 : index
    %c0_111 = arith.constant 0 : index
    %c0_112 = arith.constant 0 : index
    %229 = vector.load %arg44[%c0_110, %c0_111, %c0_112] : memref<2x8x16xf32, #tpu.memory_space<vmem>>, vector<2x8x16xf32>
    tpu.vector_store %arg44[%c0_110, %c0_111, %c0_112], %228 {strides = array<i32>} : memref<2x8x16xf32, #tpu.memory_space<vmem>>, vector<2x8x16xf32>,
    %c0_113 = arith.constant 0 : index
    %c0_114 = arith.constant 0 : index
    %c0_115 = arith.constant 0 : index
    %230 = vector.load %arg4[%c0_113, %c0_114, %c0_115] : memref<1x2x64xf32, #tpu.memory_space<vmem>>, vector<1x2x64xf32>
    %231 = vector.shape_cast %230 : vector<1x2x64xf32> to vector<2x64xf32>
    %c0_116 = arith.constant 0 : index
    %c0_117 = arith.constant 0 : index
    %232 = vector.load %arg23[%c0_116, %c0_117] : memref<32x128xf32, #tpu.memory_space<vmem>>, vector<32x128xf32>
    %cst_118 = arith.constant dense<0.000000e+00> : vector<2x128xf32>
    %233 = tpu.matmul %73, %232, %cst_118 {dimension_numbers = #tpu.dot_dimension_numbers<[1], [0], [0], [1], [0, 0, 1, 1], [], []>} : vector<2x32xf32>, vector<32x128xf32>, vector<2x128xf32> -> vector<2x128xf32>
    %c0_119 = arith.constant 0 : index
    %c0_120 = arith.constant 0 : index
    %234 = vector.load %arg24[%c0_119, %c0_120] : memref<16x128xf32, #tpu.memory_space<vmem>>, vector<16x128xf32>
    %cst_121 = arith.constant dense<0.000000e+00> : vector<2x128xf32>
    %235 = tpu.matmul %206, %234, %cst_121 {dimension_numbers = #tpu.dot_dimension_numbers<[1], [0], [0], [1], [0, 0, 1, 1], [], []>} : vector<2x16xf32>, vector<16x128xf32>, vector<2x128xf32> -> vector<2x128xf32>
    %236 = arith.addf %233, %235 : vector<2x128xf32>
    %c0_122 = arith.constant 0 : index
    %c0_123 = arith.constant 0 : index
    %237 = vector.load %arg38[%c0_122, %c0_123] : memref<2x32xf32, #tpu.memory_space<vmem>>, vector<2x32xf32>
    %c0_124 = arith.constant 0 : index
    %c0_125 = arith.constant 0 : index
    %238 = vector.load %arg25[%c0_124, %c0_125] : memref<32x128xf32, #tpu.memory_space<vmem>>, vector<32x128xf32>
    %cst_126 = arith.constant dense<0.000000e+00> : vector<2x128xf32>
    %239 = tpu.matmul %237, %238, %cst_126 {dimension_numbers = #tpu.dot_dimension_numbers<[1], [0], [0], [1], [0, 0, 1, 1], [], []>} : vector<2x32xf32>, vector<32x128xf32>, vector<2x128xf32> -> vector<2x128xf32>
    %240 = arith.addf %236, %239 : vector<2x128xf32>
    %c0_127 = arith.constant 0 : index
    %c0_128 = arith.constant 0 : index
    %241 = vector.load %arg26[%c0_127, %c0_128] : memref<1x128xf32, #tpu.memory_space<vmem>>, vector<1x128xf32>
    %242 = vector.broadcast %241 : vector<1x128xf32> to vector<2x128xf32>
    %243 = arith.addf %240, %242 : vector<2x128xf32>
    %c0_129 = arith.constant 0 : index
    %c0_130 = arith.constant 0 : index
    %244 = vector.load %arg39[%c0_129, %c0_130] : memref<2x32xf32, #tpu.memory_space<vmem>>, vector<2x32xf32>
    %245 = vector.extract_strided_slice %243 {offsets = [0, 0], sizes = [2, 32], strides = [1, 1]} : vector<2x128xf32> to vector<2x32xf32>
    %246 = arith.negf %245 : vector<2x32xf32>
    %247 = math.exp %246 : vector<2x32xf32>
    %cst_131 = arith.constant 1.000000e+00 : f32
    %248 = vector.broadcast %cst_131 : f32 to vector<2x32xf32>
    %249 = arith.addf %248, %247 : vector<2x32xf32>
    %250 = arith.divf %248, %249 : vector<2x32xf32>
    %251 = vector.extract_strided_slice %243 {offsets = [0, 32], sizes = [2, 32], strides = [1, 1]} : vector<2x128xf32> to vector<2x32xf32>
    %252 = arith.negf %251 : vector<2x32xf32>
    %253 = math.exp %252 : vector<2x32xf32>
    %cst_132 = arith.constant 1.000000e+00 : f32
    %254 = vector.broadcast %cst_132 : f32 to vector<2x32xf32>
    %255 = arith.addf %254, %253 : vector<2x32xf32>
    %256 = arith.divf %254, %255 : vector<2x32xf32>
    %257 = vector.extract_strided_slice %243 {offsets = [0, 64], sizes = [2, 32], strides = [1, 1]} : vector<2x128xf32> to vector<2x32xf32>
    %258 = math.tanh %257 : vector<2x32xf32>
    %259 = vector.extract_strided_slice %243 {offsets = [0, 96], sizes = [2, 32], strides = [1, 1]} : vector<2x128xf32> to vector<2x32xf32>
    %260 = arith.negf %259 : vector<2x32xf32>
    %261 = math.exp %260 : vector<2x32xf32>
    %cst_133 = arith.constant 1.000000e+00 : f32
    %262 = vector.broadcast %cst_133 : f32 to vector<2x32xf32>
    %263 = arith.addf %262, %261 : vector<2x32xf32>
    %264 = arith.divf %262, %263 : vector<2x32xf32>
    %265 = arith.mulf %256, %244 : vector<2x32xf32>
    %266 = arith.mulf %250, %258 : vector<2x32xf32>
    %267 = arith.addf %265, %266 : vector<2x32xf32>
    %268 = math.tanh %267 : vector<2x32xf32>
    %269 = arith.mulf %264, %268 : vector<2x32xf32>
    %270 = vector.extract_strided_slice %231 {offsets = [0, 0], sizes = [2, 32], strides = [1, 1]} : vector<2x64xf32> to vector<2x32xf32>
    %271 = arith.mulf %269, %270 : vector<2x32xf32>
    %272 = vector.extract_strided_slice %231 {offsets = [0, 32], sizes = [2, 32], strides = [1, 1]} : vector<2x64xf32> to vector<2x32xf32>
    %273 = arith.mulf %267, %272 : vector<2x32xf32>
    %c0_134 = arith.constant 0 : index
    %c0_135 = arith.constant 0 : index
    %274 = vector.load %arg38[%c0_134, %c0_135] : memref<2x32xf32, #tpu.memory_space<vmem>>, vector<2x32xf32>
    tpu.vector_store %arg38[%c0_134, %c0_135], %271 {strides = array<i32>} : memref<2x32xf32, #tpu.memory_space<vmem>>, vector<2x32xf32>,
    %c0_136 = arith.constant 0 : index
    %c0_137 = arith.constant 0 : index
    %275 = vector.load %arg39[%c0_136, %c0_137] : memref<2x32xf32, #tpu.memory_space<vmem>>, vector<2x32xf32>
    tpu.vector_store %arg39[%c0_136, %c0_137], %273 {strides = array<i32>} : memref<2x32xf32, #tpu.memory_space<vmem>>, vector<2x32xf32>,
    %c0_138 = arith.constant 0 : index
    %c0_139 = arith.constant 0 : index
    %276 = vector.load %arg27[%c0_138, %c0_139] : memref<32x8xf32, #tpu.memory_space<vmem>>, vector<32x8xf32>
    %cst_140 = arith.constant dense<0.000000e+00> : vector<2x8xf32>
    %277 = tpu.matmul %271, %276, %cst_140 {dimension_numbers = #tpu.dot_dimension_numbers<[1], [0], [0], [1], [0, 0, 1, 1], [], []>} : vector<2x32xf32>, vector<32x8xf32>, vector<2x8xf32> -> vector<2x8xf32>
    %c0_141 = arith.constant 0 : index
    %c0_142 = arith.constant 0 : index
    %278 = vector.load %arg28[%c0_141, %c0_142] : memref<16x8xf32, #tpu.memory_space<vmem>>, vector<16x8xf32>
    %cst_143 = arith.constant dense<0.000000e+00> : vector<2x8xf32>
    %279 = tpu.matmul %206, %278, %cst_143 {dimension_numbers = #tpu.dot_dimension_numbers<[1], [0], [0], [1], [0, 0, 1, 1], [], []>} : vector<2x16xf32>, vector<16x8xf32>, vector<2x8xf32> -> vector<2x8xf32>
    %280 = arith.addf %277, %279 : vector<2x8xf32>
    %c0_144 = arith.constant 0 : index
    %c0_145 = arith.constant 0 : index
    %281 = vector.load %arg29[%c0_144, %c0_145] : memref<1x8xf32, #tpu.memory_space<vmem>>, vector<1x8xf32>
    %282 = vector.broadcast %281 : vector<1x8xf32> to vector<2x8xf32>
    %283 = arith.addf %280, %282 : vector<2x8xf32>
    %c0_146 = arith.constant 0 : index
    %c0_147 = arith.constant 0 : index
    %284 = vector.load %arg30[%c0_146, %c0_147] : memref<1x32xf32, #tpu.memory_space<vmem>>, vector<1x32xf32>
    %285 = vector.broadcast %284 : vector<1x32xf32> to vector<2x32xf32>
    %286 = arith.mulf %271, %285 : vector<2x32xf32>
    %cst_148 = arith.constant dense<0.000000e+00> : vector<2xf32>
    %287 = vector.multi_reduction <add>, %286, %cst_148 [1] : vector<2x32xf32> to vector<2xf32>
    %288 = vector.shape_cast %287 : vector<2xf32> to vector<2x1xf32>
    %c0_149 = arith.constant 0 : index
    %c0_150 = arith.constant 0 : index
    %289 = vector.load %arg31[%c0_149, %c0_150] : memref<1x16xf32, #tpu.memory_space<vmem>>, vector<1x16xf32>
    %290 = vector.broadcast %289 : vector<1x16xf32> to vector<2x16xf32>
    %291 = arith.mulf %206, %290 : vector<2x16xf32>
    %cst_151 = arith.constant dense<0.000000e+00> : vector<2xf32>
    %292 = vector.multi_reduction <add>, %291, %cst_151 [1] : vector<2x16xf32> to vector<2xf32>
    %293 = vector.shape_cast %292 : vector<2xf32> to vector<2x1xf32>
    %294 = arith.addf %288, %293 : vector<2x1xf32>
    %c0_152 = arith.constant 0 : index
    %c0_153 = arith.constant 0 : index
    %295 = vector.load %arg32[%c0_152, %c0_153] : memref<1x1xf32, #tpu.memory_space<vmem>>, vector<1x1xf32>
    %296 = vector.broadcast %295 : vector<1x1xf32> to vector<2x1xf32>
    %297 = arith.addf %294, %296 : vector<2x1xf32>
    %c0_154 = arith.constant 0 : index
    %c0_155 = arith.constant 0 : index
    %c0_156 = arith.constant 0 : index
    %298 = vector.load %arg33[%c0_154, %c0_155, %c0_156] : memref<1x2x8xf32, #tpu.memory_space<vmem>>, vector<1x2x8xf32>
    %299 = vector.shape_cast %298 : vector<1x2x8xf32> to vector<2x8xf32>
    %300 = vector.shape_cast %283 : vector<2x8xf32> to vector<1x2x8xf32>
    tpu.vector_store %arg33[%c0_154, %c0_155, %c0_156], %300 {strides = array<i32>} : memref<1x2x8xf32, #tpu.memory_space<vmem>>, vector<1x2x8xf32>,
    %c0_157 = arith.constant 0 : index
    %c0_158 = arith.constant 0 : index
    %c0_159 = arith.constant 0 : index
    %301 = vector.load %arg34[%c0_157, %c0_158, %c0_159] : memref<1x2x1xf32, #tpu.memory_space<vmem>>, vector<1x2x1xf32>
    %302 = vector.shape_cast %301 : vector<1x2x1xf32> to vector<2x1xf32>
    %303 = vector.shape_cast %297 : vector<2x1xf32> to vector<1x2x1xf32>
    tpu.vector_store %arg34[%c0_157, %c0_158, %c0_159], %303 {strides = array<i32>} : memref<1x2x1xf32, #tpu.memory_space<vmem>>, vector<1x2x1xf32>,
    %c0_160 = arith.constant 0 : index
    %c0_161 = arith.constant 0 : index
    %c0_162 = arith.constant 0 : index
    %304 = vector.load %arg35[%c0_160, %c0_161, %c0_162] : memref<1x2x8xf32, #tpu.memory_space<vmem>>, vector<1x2x8xf32>
    %305 = vector.shape_cast %304 : vector<1x2x8xf32> to vector<2x8xf32>
    %306 = vector.shape_cast %178 : vector<2x8xf32> to vector<1x2x8xf32>
    tpu.vector_store %arg35[%c0_160, %c0_161, %c0_162], %306 {strides = array<i32>} : memref<1x2x8xf32, #tpu.memory_space<vmem>>, vector<1x2x8xf32>,
    %c0_163 = arith.constant 0 : index
    %c0_164 = arith.constant 0 : index
    %307 = vector.load %arg45[%c0_163, %c0_164] : memref<2x8xf32, #tpu.memory_space<vmem>>, vector<2x8xf32>
    tpu.vector_store %arg45[%c0_163, %c0_164], %283 {strides = array<i32>} : memref<2x8xf32, #tpu.memory_space<vmem>>, vector<2x8xf32>,
    return
  }
  func.func @transform_0(%arg0: i32, %arg1: memref<8xi32, #tpu.memory_space<smem>>) -> (i32, i32, i32) {
    %c0_i32 = arith.constant 0 : i32
    %c0_i32_0 = arith.constant 0 : i32
    %c0_i32_1 = arith.constant 0 : i32
    return %arg0, %c0_i32, %c0_i32_0 : i32, i32, i32
  }
  func.func @transform_1(%arg0: i32, %arg1: memref<8xi32, #tpu.memory_space<smem>>) -> (i32, i32, i32) {
    %c0_i32 = arith.constant 0 : i32
    %c0_i32_0 = arith.constant 0 : i32
    %c0_i32_1 = arith.constant 0 : i32
    return %arg0, %c0_i32, %c0_i32_0 : i32, i32, i32
  }
  func.func @transform_2(%arg0: i32, %arg1: memref<8xi32, #tpu.memory_space<smem>>) -> (i32, i32, i32) {
    %c0_i32 = arith.constant 0 : i32
    %c0_i32_0 = arith.constant 0 : i32
    %c0_i32_1 = arith.constant 0 : i32
    return %arg0, %c0_i32, %c0_i32_0 : i32, i32, i32
  }
  func.func @transform_3(%arg0: i32, %arg1: memref<8xi32, #tpu.memory_space<smem>>) -> (i32, i32, i32) {
    %c0_i32 = arith.constant 0 : i32
    %c0_i32_0 = arith.constant 0 : i32
    %c0_i32_1 = arith.constant 0 : i32
    return %arg0, %c0_i32, %c0_i32_0 : i32, i32, i32
  }
  func.func @transform_4(%arg0: i32, %arg1: memref<8xi32, #tpu.memory_space<smem>>) -> (i32, i32) {
    %c0_i32 = arith.constant 0 : i32
    %c0_i32_0 = arith.constant 0 : i32
    %c0_i32_1 = arith.constant 0 : i32
    return %c0_i32, %c0_i32_0 : i32, i32
  }
  func.func @transform_5(%arg0: i32, %arg1: memref<8xi32, #tpu.memory_space<smem>>) -> (i32, i32) {
    %c0_i32 = arith.constant 0 : i32
    %c0_i32_0 = arith.constant 0 : i32
    %c0_i32_1 = arith.constant 0 : i32
    return %c0_i32, %c0_i32_0 : i32, i32
  }
  func.func @transform_6(%arg0: i32, %arg1: memref<8xi32, #tpu.memory_space<smem>>) -> (i32, i32) {
    %c0_i32 = arith.constant 0 : i32
    %c0_i32_0 = arith.constant 0 : i32
    %c0_i32_1 = arith.constant 0 : i32
    return %c0_i32, %c0_i32_0 : i32, i32
  }
  func.func @transform_7(%arg0: i32, %arg1: memref<8xi32, #tpu.memory_space<smem>>) -> (i32, i32) {
    %c0_i32 = arith.constant 0 : i32
    %c0_i32_0 = arith.constant 0 : i32
    %c0_i32_1 = arith.constant 0 : i32
    return %c0_i32, %c0_i32_0 : i32, i32
  }
  func.func @transform_8(%arg0: i32, %arg1: memref<8xi32, #tpu.memory_space<smem>>) -> (i32, i32) {
    %c0_i32 = arith.constant 0 : i32
    %c0_i32_0 = arith.constant 0 : i32
    %c0_i32_1 = arith.constant 0 : i32
    return %c0_i32, %c0_i32_0 : i32, i32
  }
  func.func @transform_9(%arg0: i32, %arg1: memref<8xi32, #tpu.memory_space<smem>>) -> (i32, i32) {
    %c0_i32 = arith.constant 0 : i32
    %c0_i32_0 = arith.constant 0 : i32
    %c0_i32_1 = arith.constant 0 : i32
    return %c0_i32, %c0_i32_0 : i32, i32
  }
  func.func @transform_10(%arg0: i32, %arg1: memref<8xi32, #tpu.memory_space<smem>>) -> (i32, i32) {
    %c0_i32 = arith.constant 0 : i32
    %c0_i32_0 = arith.constant 0 : i32
    %c0_i32_1 = arith.constant 0 : i32
    return %c0_i32, %c0_i32_0 : i32, i32
  }
  func.func @transform_11(%arg0: i32, %arg1: memref<8xi32, #tpu.memory_space<smem>>) -> (i32, i32) {
    %c0_i32 = arith.constant 0 : i32
    %c0_i32_0 = arith.constant 0 : i32
    %c0_i32_1 = arith.constant 0 : i32
    return %c0_i32, %c0_i32_0 : i32, i32
  }
  func.func @transform_12(%arg0: i32, %arg1: memref<8xi32, #tpu.memory_space<smem>>) -> (i32, i32) {
    %c0_i32 = arith.constant 0 : i32
    %c0_i32_0 = arith.constant 0 : i32
    %c0_i32_1 = arith.constant 0 : i32
    return %c0_i32, %c0_i32_0 : i32, i32
  }
  func.func @transform_13(%arg0: i32, %arg1: memref<8xi32, #tpu.memory_space<smem>>) -> (i32, i32) {
    %c0_i32 = arith.constant 0 : i32
    %c0_i32_0 = arith.constant 0 : i32
    %c0_i32_1 = arith.constant 0 : i32
    return %c0_i32, %c0_i32_0 : i32, i32
  }
  func.func @transform_14(%arg0: i32, %arg1: memref<8xi32, #tpu.memory_space<smem>>) -> (i32, i32) {
    %c0_i32 = arith.constant 0 : i32
    %c0_i32_0 = arith.constant 0 : i32
    %c0_i32_1 = arith.constant 0 : i32
    return %c0_i32, %c0_i32_0 : i32, i32
  }
  func.func @transform_15(%arg0: i32, %arg1: memref<8xi32, #tpu.memory_space<smem>>) -> (i32, i32) {
    %c0_i32 = arith.constant 0 : i32
    %c0_i32_0 = arith.constant 0 : i32
    %c0_i32_1 = arith.constant 0 : i32
    return %c0_i32, %c0_i32_0 : i32, i32
  }
  func.func @transform_16(%arg0: i32, %arg1: memref<8xi32, #tpu.memory_space<smem>>) -> (i32, i32) {
    %c0_i32 = arith.constant 0 : i32
    %c0_i32_0 = arith.constant 0 : i32
    %c0_i32_1 = arith.constant 0 : i32
    return %c0_i32, %c0_i32_0 : i32, i32
  }
  func.func @transform_17(%arg0: i32, %arg1: memref<8xi32, #tpu.memory_space<smem>>) -> (i32, i32) {
    %c0_i32 = arith.constant 0 : i32
    %c0_i32_0 = arith.constant 0 : i32
    %c0_i32_1 = arith.constant 0 : i32
    return %c0_i32, %c0_i32_0 : i32, i32
  }
  func.func @transform_18(%arg0: i32, %arg1: memref<8xi32, #tpu.memory_space<smem>>) -> (i32, i32) {
    %c0_i32 = arith.constant 0 : i32
    %c0_i32_0 = arith.constant 0 : i32
    %c0_i32_1 = arith.constant 0 : i32
    return %c0_i32, %c0_i32_0 : i32, i32
  }
  func.func @transform_19(%arg0: i32, %arg1: memref<8xi32, #tpu.memory_space<smem>>) -> (i32, i32) {
    %c0_i32 = arith.constant 0 : i32
    %c0_i32_0 = arith.constant 0 : i32
    %c0_i32_1 = arith.constant 0 : i32
    return %c0_i32, %c0_i32_0 : i32, i32
  }
  func.func @transform_20(%arg0: i32, %arg1: memref<8xi32, #tpu.memory_space<smem>>) -> (i32, i32) {
    %c0_i32 = arith.constant 0 : i32
    %c0_i32_0 = arith.constant 0 : i32
    %c0_i32_1 = arith.constant 0 : i32
    return %c0_i32, %c0_i32_0 : i32, i32
  }
  func.func @transform_21(%arg0: i32, %arg1: memref<8xi32, #tpu.memory_space<smem>>) -> (i32, i32) {
    %c0_i32 = arith.constant 0 : i32
    %c0_i32_0 = arith.constant 0 : i32
    %c0_i32_1 = arith.constant 0 : i32
    return %c0_i32, %c0_i32_0 : i32, i32
  }
  func.func @transform_22(%arg0: i32, %arg1: memref<8xi32, #tpu.memory_space<smem>>) -> (i32, i32) {
    %c0_i32 = arith.constant 0 : i32
    %c0_i32_0 = arith.constant 0 : i32
    %c0_i32_1 = arith.constant 0 : i32
    return %c0_i32, %c0_i32_0 : i32, i32
  }
  func.func @transform_23(%arg0: i32, %arg1: memref<8xi32, #tpu.memory_space<smem>>) -> (i32, i32) {
    %c0_i32 = arith.constant 0 : i32
    %c0_i32_0 = arith.constant 0 : i32
    %c0_i32_1 = arith.constant 0 : i32
    return %c0_i32, %c0_i32_0 : i32, i32
  }
  func.func @transform_24(%arg0: i32, %arg1: memref<8xi32, #tpu.memory_space<smem>>) -> (i32, i32) {
    %c0_i32 = arith.constant 0 : i32
    %c0_i32_0 = arith.constant 0 : i32
    %c0_i32_1 = arith.constant 0 : i32
    return %c0_i32, %c0_i32_0 : i32, i32
  }
  func.func @transform_25(%arg0: i32, %arg1: memref<8xi32, #tpu.memory_space<smem>>) -> (i32, i32) {
    %c0_i32 = arith.constant 0 : i32
    %c0_i32_0 = arith.constant 0 : i32
    %c0_i32_1 = arith.constant 0 : i32
    return %c0_i32, %c0_i32_0 : i32, i32
  }
  func.func @transform_26(%arg0: i32, %arg1: memref<8xi32, #tpu.memory_space<smem>>) -> (i32, i32) {
    %c0_i32 = arith.constant 0 : i32
    %c0_i32_0 = arith.constant 0 : i32
    %c0_i32_1 = arith.constant 0 : i32
    return %c0_i32, %c0_i32_0 : i32, i32
  }
  func.func @transform_27(%arg0: i32, %arg1: memref<8xi32, #tpu.memory_space<smem>>) -> (i32, i32) {
    %c0_i32 = arith.constant 0 : i32
    %c0_i32_0 = arith.constant 0 : i32
    %c0_i32_1 = arith.constant 0 : i32
    return %c0_i32, %c0_i32_0 : i32, i32
  }
  func.func @transform_28(%arg0: i32, %arg1: memref<8xi32, #tpu.memory_space<smem>>) -> (i32, i32) {
    %c0_i32 = arith.constant 0 : i32
    %c0_i32_0 = arith.constant 0 : i32
    %c0_i32_1 = arith.constant 0 : i32
    return %c0_i32, %c0_i32_0 : i32, i32
  }
  func.func @transform_29(%arg0: i32, %arg1: memref<8xi32, #tpu.memory_space<smem>>) -> (i32, i32) {
    %c0_i32 = arith.constant 0 : i32
    %c0_i32_0 = arith.constant 0 : i32
    %c0_i32_1 = arith.constant 0 : i32
    return %c0_i32, %c0_i32_0 : i32, i32
  }
  func.func @transform_30(%arg0: i32, %arg1: memref<8xi32, #tpu.memory_space<smem>>) -> (i32, i32) {
    %c0_i32 = arith.constant 0 : i32
    %c0_i32_0 = arith.constant 0 : i32
    %c0_i32_1 = arith.constant 0 : i32
    return %c0_i32, %c0_i32_0 : i32, i32
  }
  func.func @transform_31(%arg0: i32, %arg1: memref<8xi32, #tpu.memory_space<smem>>) -> (i32, i32, i32) {
    %c0_i32 = arith.constant 0 : i32
    %c0_i32_0 = arith.constant 0 : i32
    %c0_i32_1 = arith.constant 0 : i32
    return %arg0, %c0_i32, %c0_i32_0 : i32, i32, i32
  }
  func.func @transform_32(%arg0: i32, %arg1: memref<8xi32, #tpu.memory_space<smem>>) -> (i32, i32, i32) {
    %c0_i32 = arith.constant 0 : i32
    %c0_i32_0 = arith.constant 0 : i32
    %c0_i32_1 = arith.constant 0 : i32
    return %arg0, %c0_i32, %c0_i32_0 : i32, i32, i32
  }
  func.func @transform_33(%arg0: i32, %arg1: memref<8xi32, #tpu.memory_space<smem>>) -> (i32, i32, i32) {
    %c0_i32 = arith.constant 0 : i32
    %c0_i32_0 = arith.constant 0 : i32
    %c0_i32_1 = arith.constant 0 : i32
    return %arg0, %c0_i32, %c0_i32_0 : i32, i32, i32
  }
}

</mosaic_0001>

<bundles_post_ra>
// kernel: _lambda_.2
= control target key start
LH: loop header
LB: loop body
LE: loop exit
PB: predicated region body
PF: predicated region fallthrough
CT: control target
= control target key end

     0   :  { %vm23_vm0 = vcmask 64512   ;;  %vm113_vm1 = vcmask 130048   ;;  %s301_s1 = inlined_call_operand.vmem [shape: f32[8,16], index: 1, kind: input, shape index: {}]   ;;  %s302_s0 = inlined_call_operand.vmem [shape: f32[16,8], index: 0, kind: input, shape index: {}]   ;;  %s303_s2 = inlined_call_operand.vmem [shape: f32[16,16], index: 2, kind: input, shape index: {}]   ;;  %s304_s3 = inlined_call_operand.vmem [shape: f32[16,16], index: 3, kind: input, shape index: {}]   ;;  %s305_s4 = inlined_call_operand.vmem [shape: f32[16,16], index: 4, kind: input, shape index: {}]   ;;  %s306_s5 = inlined_call_operand.vmem [shape: f32[16,16], index: 5, kind: output, shape index: {}]  }
   0x1   :  { %v22_v0 = vld [vmem:[%s301_s1] sm:$0xff]  ;;  %v21_v2 = vld [vmem:[%s302_s0 + $0x8] sm:$0xff] }
   0x2   :  { %v20_v1 = vld [vmem:[%s302_s0] sm:$0xff]  ;;  %218 = vmatprep.subr.mxu0 %v22_v0  ;;  %v112_v4 = vld [vmem:[%s303_s2 + $0x8] sm:$0xff] }
   0x3   :  { %220 = vmatprep.mubr.msk.f32.mxu0 %vm23_vm0, %v20_v1  ;;  %219 = vmatpush3.msra.mxu0 %v22_v0  ;;  %v111_v3 = vld [vmem:[%s303_s2] sm:$0xff]  ;;  %v108_v10 = vld [vmem:[%s304_s3 + $0x8] sm:$0xff] }
   0x4   :  { %221 = vmatmul.mubr.msk.f32.vlgmr.msra.gmra.mrb[0].mxu0 %vm23_vm0, %v21_v2  ;;  %v230_v5 = vpack.c.bf16 %v112_v4, %v111_v3  ;;  %v107_v9 = vld [vmem:[%s304_s3] sm:$0xff]  ;;  %v198_v15 = vld [vmem:[%s305_s4 + $0x8] sm:$0xff] }
   0x5   :  { %v197_v18 = vld [vmem:[%s305_s4] sm:$0xff] }
   0x6   :  { %231 = vmatprep.subr.bf16.mxu1 %v230_v5 }
   0x7   :  { %233 = vmatpush3.bf16.msra.mxu1 %v230_v5 }
  0xd7   :  { %v222_v6 = vpop.f32.mrb[0].mxu0 }
  0xd8   :  { %v106_v7 = vmax.f32 %v222_v6, 0.0  ;;  %v96_v8 = vpop.f32.mrb[1].mxu0 }
  0xd9   :  { %v105_v11 = vmax.f32 %v96_v8, 0.0 }
  0xda   :  { %v110_v13 = vmul.f32 %v108_v10, %v106_v7 }
  0xdb   :  { %v109_v12 = vmul.f32 %v107_v9, %v105_v11 }
  0xdd   :  { %227 = vmatprep.mubr.msk.f32.mxu1 %vm113_vm1, %v109_v12 }
  0xde   :  { %228 = vmatmul.mubr.msk.f32.vlgmr.msra.gmra.mrb[0].mxu1 %vm113_vm1, %v110_v13 }
 0x1b1   :  { %v229_v14 = vpop.f32.mrb[0].mxu1 }
 0x1b2   :  { %v196_v16 = vmax.f32 %v229_v14, 0.0  ;;  %v186_v17 = vpop.f32.mrb[1].mxu1 }
 0x1b3   :  { %v195_v19 = vmax.f32 %v186_v17, 0.0 }
 0x1b4   :  { %v200_v20 = vmul.f32 %v198_v15, %v196_v16 }
 0x1b5   :  { %v199_v21 = vmul.f32 %v197_v18, %v195_v19 }
 0x1b6   :  { %202 = vst.msk [vmem:[%s306_s5 + $0x8] sm:$0xff] %vm113_vm1, %v200_v20 }
 0x1b7   :  { %201 = vst.msk [vmem:[%s306_s5] sm:$0xff] %vm113_vm1, %v199_v21 }

// kernel: _lambda_.3
= control target key start
LH: loop header
LB: loop body
LE: loop exit
PB: predicated region body
PF: predicated region fallthrough
CT: control target
= control target key end

     0   :  { %s3730_s6 = smov 1   ;;  %s3731_s10 = smov 2   ;;  %s4305_s0 = inlined_call_operand.smem [shape: u32[35], index: -1, kind: input, shape index: {}] }
   0x1   :  { %s3784_s5 = sld [smem:[%s4305_s0]]   ;;  %s3732_s14 = smov 3  }
   0x2   :  { %s3789_s9 = sld [smem:[%s4305_s0 + %s3730_s6]]   ;;  %s3733_s18 = smov 4  }
   0x3   :  { %s3794_s13 = sld [smem:[%s4305_s0 + %s3731_s10]]   ;;  %s3734_s22 = smov 5  }
   0x4   :  { %s3799_s17 = sld [smem:[%s4305_s0 + %s3732_s14]]   ;;  %s3735_s26 = smov 6  }
   0x5   :  { %s3804_s21 = sld [smem:[%s4305_s0 + %s3733_s18]]   ;;  %s3736_s30 = smov 7  }
   0x6   :  { %s3809_s25 = sld [smem:[%s4305_s0 + %s3734_s22]]   ;;  %s3737_s4 = smov 8  }
   0x7   :  { %s3814_s29 = sld [smem:[%s4305_s0 + %s3735_s26]]   ;;  %s3738_s10 = smov 9  }
   0x8   :  { %s3819_s3 = sld [smem:[%s4305_s0 + %s3736_s30]]   ;;  %s3739_s15 = smov 10  }
   0x9   :  { %s3824_s8 = sld [smem:[%s4305_s0 + %s3737_s4]]   ;;  %s3740_s20 = smov 11  }
   0xa   :  { %s3829_s14 = sld [smem:[%s4305_s0 + %s3738_s10]]   ;;  %s3741_s26 = smov 12  }
   0xb   :  { %s3834_s19 = sld [smem:[%s4305_s0 + %s3739_s15]]   ;;  %s3742_s1 = smov 13  }
   0xc   :  { %4320 = sst [smem:[#allocation16_spill]] %s3809_s25  ;;  %s3743_s7 = smov 14  }
   0xd   :  { %s3839_s24 = sld [smem:[%s4305_s0 + %s3740_s20]]   ;;  %s3744_s15 = smov 15  }
   0xe   :  { %4321 = sst [smem:[#allocation17_spill]] %s3819_s3  ;;  %s3745_s22 = smov 16  }
   0xf   :  { %s3844_s30 = sld [smem:[%s4305_s0 + %s3741_s26]]   ;;  %s3746_s28 = smov 17  }
  0x10   :  { %s3849_s6 = sld [smem:[%s4305_s0 + %s3742_s1]]  }
  0x11   :  { %s3854_s12 = sld [smem:[%s4305_s0 + %s3743_s7]]   ;;  %s3747_s7 = smov 18  }
  0x12   :  { %s3859_s20 = sld [smem:[%s4305_s0 + %s3744_s15]]   ;;  %s3748_s15 = smov 19  }
  0x13   :  { %s3864_s27 = sld [smem:[%s4305_s0 + %s3745_s22]]   ;;  %s3749_s22 = smov 20  }
  0x14   :  { %s3869_s4 = sld [smem:[%s4305_s0 + %s3746_s28]]   ;;  %s3750_s28 = smov 21  }
  0x15   :  { %s3879_s25 = sld [smem:[%s4305_s0 + %s3748_s15]]   ;;  %s3752_s15 = smov 23  }
  0x16   :  { %4322 = sst [smem:[#allocation18_spill]] %s3849_s6 }
  0x17   :  { %s3874_s6 = sld [smem:[%s4305_s0 + %s3747_s7]]   ;;  %s3751_s7 = smov 22  }
  0x19   :  { %4323 = sst [smem:[#allocation19_spill]] %s3864_s27 }
  0x1a   :  { %4324 = sst [smem:[#allocation20_spill]] %s3869_s4 }
  0x1b   :  { %4326 = sst [smem:[#allocation22_spill]] %s3879_s25 }
  0x1c   :  { %s3884_s27 = sld [smem:[%s4305_s0 + %s3749_s22]]   ;;  %s3753_s22 = smov 24  }
  0x1d   :  { %4325 = sst [smem:[#allocation21_spill]] %s3874_s6 }
  0x1e   :  { %s3889_s4 = sld [smem:[%s4305_s0 + %s3750_s28]]   ;;  %s3754_s28 = smov 25  }
  0x1f   :  { %s3894_s6 = sld [smem:[%s4305_s0 + %s3751_s7]]   ;;  %s3755_s7 = smov 26  }
  0x20   :  { %s3899_s25 = sld [smem:[%s4305_s0 + %s3752_s15]]   ;;  %s3756_s15 = smov 27  }
  0x21   :  { %s3914_s16 = sld [smem:[%s4305_s0 + %s3755_s7]]   ;;  %s3759_s7 = smov 30  }
  0x22   :  { %4327 = sst [smem:[#allocation23_spill]] %s3884_s27 }
  0x23   :  { %s3904_s27 = sld [smem:[%s4305_s0 + %s3753_s22]]   ;;  %s3757_s22 = smov 28  }
  0x24   :  { %4328 = sst [smem:[#allocation24_spill]] %s3889_s4 }
  0x25   :  { %4329 = sst [smem:[#allocation25_spill]] %s3894_s6  ;;  %s3760_s6 = smov 32  }
  0x26   :  { %4330 = sst [smem:[#allocation26_spill]] %s3899_s25 }
  0x27   :  { %s3909_s4 = sld [smem:[%s4305_s0 + %s3754_s28]]   ;;  %s3758_s28 = smov 29  }
  0x28   :  { %4333 = sst [smem:[#allocation29_spill]] %s3914_s16  ;;  %s75_s16 = sshll.u32 %s3784_s5, 4  ;;  %s76_s16 = int_to_ptr.vmem [resolvable:$true] %s75_s16 }
  0x29   :  { %4331 = sst [smem:[#allocation27_spill]] %s3904_s27  ;;  %s3761_s27 = smov 33  }
  0x2a   :  { %s3919_s23 = sld [smem:[%s4305_s0 + %s3756_s15]]   ;;  %p3713_p1 = scmp.lt.s32.totalorder %s76_s16, %s76_s16 }
  0x2b   :  { %s3924_s1 = sld [smem:[%s4305_s0 + %s3757_s22]]  }
  0x2c   :  { %s3929_s10 = sld [smem:[%s4305_s0 + %s3758_s28]]  }
  0x2d   :  { %4332 = sst [smem:[#allocation28_spill]] %s3909_s4  ;;  %s3762_s4 = smov 34  }
  0x2e   :  { %s3934_s25 = sld [smem:[%s4305_s0 + %s3759_s7]]   ;;  %s3708_s7 = scalar_lea.vmem %s76_s16, 16 }
  0x2f   :  { %p3709_p0 = scmp.ne.s32.totalorder %s76_s16, %s3708_s7  ;;  %p3714_p2 = scmp.lt.s32.totalorder %s3708_s7, %s3708_s7 }
  0x30   :  { %4334 = sst [smem:[#allocation30_spill]] %s3919_s23 }
  0x31   :  { %4335 = sst [smem:[#allocation31_spill]] %s3924_s1  ;;  %p3715_p3 = por %p3714_p2, %p3713_p1 }
  0x32   :  { %4336 = sst [smem:[#allocation32_spill]] %s3929_s10 }
  0x33   :  { %s3939_s23 = sld [smem:[%s4305_s0 + %s3760_s6]]   ;;  %p3716_p4 = pnand %p3715_p3, %p3709_p0 }
  0x34   :  { %s3944_s1 = sld [smem:[%s4305_s0 + %s3761_s27]]  }
  0x35   :  { %s3949_s10 = sld [smem:[%s4305_s0 + %s3762_s4]]  }
  0x36   :  { %3719 = shalt.err (!%p3716_p4)  }
  0x37   :  { %s3763_s11 = smov [#allocation13]   ;;  %s3764_s6 = smov 31  }
  0x38   :  { %78 = dma.vmem_to_smem %s76_s16, 16, %s3763_s11, [#allocation12] }
  0x39   :  { %s3291_s27 = sld [smem:[%s4305_s0 + %s3764_s6]]  }
  0x3f   :  { %v79_v0 = vstv %s3291_s27 }
  0x40   :  { %80 = vst [vmem:[#allocation14] sm:$0x1] %v79_v0 }
  0x41   :  { %3724 = dma.done.wait [#allocation12], 16 }
  0x42   :  { %3725 = vsyncadd [#allocation12], 4294967280 }
  0x43   :  { %82 = sfence }
  0x44   :  { %s3955_s5 = smov 0  }
  0x45 LB: > { %s4337_s3 = sld [smem:[#allocation17_spill]]  ;;  %s3961_s22 = sadd.s32 4294967295, %s3728_s5   ;;  %s3728_s5 = sphi %s3955_s5, %s88_s5  }
  0x46   : > { %p3299_p5 = scmp.ge.s32.totalorder %s3728_s5, 1  ;;  %p962_p6 = scmp.lt.s32.totalorder %s3728_s5, 9 }
  0x48   : > { %p963_p7 = pnand %p3299_p5, %p962_p6 }
  0x49   : > { %p1064_p8 = scmp.lt.s32.totalorder (!%p963_p7), %s3961_s22, 7  ;;  %p3307_p9 = scmp.ne.s32.totalorder (!%p963_p7), %s3961_s22, 0 }
  0x4a   : > { %966 = sbr.rel (%p963_p7) target bundleno = 3791 (0xecf), region = 144 }
  0x51   : > { %s1065_s0 = scalar_select %p1064_p8, %s3961_s22, 7 }
  0x52   : > { %1095 = sbr.rel (%p3307_p9) target bundleno = 90 (0x5a), region = 148  ;;  %vm1096_vm0 = vcmask (!%p3307_p9), 254976   ;;  %vm1101_vm1 = vcmask (!%p3307_p9), 123904   ;;  %vm1103_vm2 = vcmask (!%p3307_p9), 58368   ;;  %v3765_v1 = vmov (!%p3307_p9), 0.0  }
  0x53   : > { %s3967_s26 = sshll.u32 %s1065_s0, 1  ;;  %1097 = vst.msk [vmem:[#allocation2] sm:$0x3] (!%p3307_p9), %vm1096_vm0, %v3765_v1  ;;  %1098 = vst.msk [vmem:[#allocation3] sm:$0x3] (!%p3307_p9), %vm1096_vm0, %v3765_v1  ;;  %vm1106_vm3 = vcmask (!%p3307_p9), 130048  }
  0x54   : > { %s1067_s4 = scalar_lea.vmem %s3789_s9, %s3967_s26  ;;  %s1071_s28 = scalar_lea.vmem %s3794_s13, %s3967_s26  ;;  %1099 = vst.msk [vmem:[#allocation4] sm:$0x3] (!%p3307_p9), %vm1096_vm0, %v3765_v1  ;;  %1100 = vst.msk [vmem:[#allocation5] sm:$0x3] (!%p3307_p9), %vm1096_vm0, %v3765_v1 }
  0x55   : > { %s1079_s16 = scalar_lea.vmem %s3804_s21, %s3967_s26  ;;  %s1091_s6 = scalar_lea.vmem %s3949_s10, %s3967_s26  ;;  %1102 = vst.msk [vmem:[#allocation6] sm:$0x3] (!%p3307_p9), %vm1101_vm1, %v3765_v1 }
  0x56   : > { %1104 = vst.msk [vmem:[#allocation7] sm:$0x3] (!%p3307_p9), %vm1103_vm2, %v3765_v1  ;;  %1105 = vst.msk [vmem:[#allocation8] sm:$0x3] (!%p3307_p9), %vm1103_vm2, %v3765_v1 }
  0x57   : > { %1111 = vst.msk [vmem:[#allocation11] sm:$0x3] (!%p3307_p9), %vm1103_vm2, %v3765_v1 }
  0x58   : > { %1107 = vst.msk [vmem:[#allocation9] sm:$0xff] (!%p3307_p9), %vm1106_vm3, %v3765_v1  ;;  %1108 = vst.msk [vmem:[#allocation9 + $0x8] sm:$0xff] (!%p3307_p9), %vm1106_vm3, %v3765_v1 }
  0x59   : > { %1109 = vst.msk [vmem:[#allocation10] sm:$0xff] %vm1106_vm3, %v3765_v1  ;;  %1110 = vst.msk [vmem:[#allocation10 + $0x8] sm:$0xff] %vm1106_vm3, %v3765_v1 }
  0x5a PF: > { %v1115_v2 = vld [vmem:[%s3814_s29] sm:$0xff]  ;;  %vm1116_vm4 = vcmask 64512   ;;  %v3766_v4 = vmov 0.0   ;;  %vm3767_vm5 = vmmov 0   ;;  %v1193_v6 = vld [vmem:[%s4337_s3 + $0x8] sm:$0xff]  ;;  %v3768_v8 = vmov 0.0|0.0  }
  0x5b   : > { %3414 = vmatprep.subr.mxu1 %v3766_v4  ;;  %3416 = vmatprep.mubr.msk.f32.mxu1 %vm3767_vm5, %v3766_v4  ;;  %v1192_v5 = vld [vmem:[%s4337_s3] sm:$0xff]  ;;  %v1289_v11 = vld [vmem:[%s3829_s14 + $0x8] sm:$0xff]  ;;  %s3769_s15 = smov 112   ;;  %vm1194_vm6 = vcmask 130048   ;;  %v1439_v24 = vld [vmem:[%s3834_s19 + $0x10] sm:$0xff]  ;;  %vm1441_vm7 = vcmask 261120   ;;  %v1570_v57 = vlaneseq }
  0x5c   : > { %3415 = vmatpush3.msra.mxu1 %v1115_v2  ;;  %3430 = vmatprep.mubr.msk.f32.mxu0 %vm3767_vm5, %v3766_v4  ;;  %v3566_v7 = vpack.c.bf16 %v1193_v6, %v1192_v5  ;;  %v1113_v9 = vld [vmem:[%s1079_s16] sm:$0x3]  ;;  %v1438_v18 = vld [vmem:[%s3834_s19 + $0x8] sm:$0xff]  ;;  %v1440_v25 = vld [vmem:[%s3834_s19 + $0x18] sm:$0xff]  ;;  %s3770_s18 = smov 32   ;;  %s1274_s27 = sld [smem:[#allocation13 + %s3961_s22]] }
  0x5d   : > { %3565 = vmatprep.subr.bf16.mxu1 %v3768_v8  ;;  %3568 = vmatprep.subr.bf16.mxu0 %v3768_v8  ;;  %v1288_v10 = vld [vmem:[%s3829_s14] sm:$0xff]  ;;  %v1287_v20 = vld [vmem:[#allocation6] sm:$0x3]  ;;  %v3578_v26 = vpack.c.bf16 %v1440_v25, %v1439_v24  ;;  %v4036_v58 = vshrl.u32 %v1570_v57, 7  ;;  %v4038_v59 = vand.u32 127, %v1570_v57  ;;  %v3773_v0 = vmov 1.0  }
  0x5e   : > { %1270 = vrot.lane.b32.xlu0 %v1113_v9, %s3769_s15  ;;  %v3569_v12 = vpack.c.bf16 %v1289_v11, %v1288_v10  ;;  %v1437_v17 = vld [vmem:[%s3834_s19] sm:$0xff]  ;;  %v1286_v22 = vld [vmem:[%s3824_s8 + $0x8] sm:$0xff]  ;;  %v2005_v10 = vld [vmem:[%s3844_s30 + $0x10] sm:$0xff]  ;;  %vm1563_vm10 = vcmask 254976   ;;  %vm2173_vm11 = vcmask 1041409   ;;  %vm2177_vm13 = vcmask 58368  }
  0x5f   : > { %v1114_v3 = vld [vmem:[#allocation11] sm:$0x3]  ;;  %v3575_v19 = vpack.c.bf16 %v1438_v18, %v1437_v17  ;;  %v1285_v21 = vld [vmem:[%s3824_s8] sm:$0xff]  ;;  %v1577_v61 = vadd.s32 4294967294, %v4038_v59  ;;  %v1676_v62 = vadd.s32 4294967295, %v4038_v59  ;;  %s4344_s7 = sld [smem:[#allocation18_spill]] }
  0x60   : > { %3417 = vmatmul.mubr.msk.f32.vlgmr.msra.gmra.mrb[0].mxu1 %vm1116_vm4, %v1114_v3  ;;  %3570 = vmatpush3.bf16.msra.mxu0 %v3569_v12  ;;  %v3572_v23 = vpack.c.bf16 %v1286_v22, %v1285_v21  ;;  %v1436_v27 = vld [vmem:[#allocation2] sm:$0x3]  ;;  %v1524_v28 = vld [vmem:[#allocation3] sm:$0x3]  ;;  %v4049_v63 = vld [vmem:[#allocation7] sm:$0x3] }
  0x61   : > { %3423 = vmatprep.mubr.msk.f32.mxu1 %vm3767_vm5, %v3766_v4  ;;  %3567 = vmatpush3.bf16.msra.mxu1 %v3566_v7  ;;  %v1112_v32 = vld [vmem:[%s1067_s4] sm:$0x3]  ;;  %s4318_s4 = smov 64   ;;  %vm1578_vm8 = vcmp.eq.s32.totalorder %v4036_v58, %v1577_v61  ;;  %vm1677_vm9 = vcmp.eq.s32.totalorder %v4036_v58, %v1676_v62  ;;  %v4053_v1 = vld [vmem:[#allocation8] sm:$0x3]  ;;  %v2006_v12 = vld [vmem:[%s3844_s30 + $0x18] sm:$0xff] }
  0x62   : > { %3571 = vmatprep.subr.bf16.mxu1 %v3768_v8  ;;  %3574 = vmatprep.subr.bf16.mxu0 %v3768_v8  ;;  %p1275_p10 = scmp.gt.s32.totalorder %s1274_s27, 0  ;;  %v3313_v47 = vld [vmem:[%s3839_s24] ss:$0 sm:$0xff]  ;;  %s4315_s27 = smov 96   ;;  %vm2489_vm15 = vcmask 123904   ;;  %vm3106_vm0 = vcmask 1024  }
  0x63   : > { %3431 = vmatmul.mubr.msk.f32.vlgmr.msra.gmra.mrb[0].mxu0 %vm1194_vm6, %v1287_v20  ;;  %1533 = vrot.lane.b32.xlu1 %v1524_v28, %s3770_s18  ;;  %v4043_v60 = vld [vmem:[%s1071_s28] sm:$0x3]  ;;  %s4338_s28 = sld [smem:[#allocation16_spill]]  ;;  %s4345_s11 = sld [smem:[#allocation26_spill]] }
  0x64   : > { %3576 = vmatpush3.bf16.msra.mxu0 %v3575_v19  ;;  %3448 = vmatprep.mubr.msk.f32.mxu0 %vm3767_vm5, %v3766_v4  ;;  %s1276_s0 = scalar_select %p1275_p10, 1, 0  ;;  %v2003_v7 = vld [vmem:[%s3844_s30] sm:$0xff] }
  0x65   : > { %3577 = vmatprep.subr.bf16.mxu0 %v3768_v8  ;;  %s2565_s2 = sadd.s32 1, %s3961_s22  ;;  %s4355_s3 = smov 64  }
  0x66   : > { %s1277_s16 = scvt.s32.f32 %s1276_s0  ;;  %s4339_s0 = sld [smem:[#allocation19_spill]] }
  0x68   : > { %3579 = vmatpush3.bf16.msra.mxu0 %v3578_v26  ;;  %s1280_s15 = ssub.f32 1.0, %s1277_s16  ;;  %v1278_v35 = vstv %s1277_s16  ;;  %s4340_s16 = sld [smem:[#allocation21_spill]] }
  0x69   : > { %3461 = vmatprep.subr.mxu0 %v3766_v4 }
  0x6a   : > { %v1281_v30 = vstv %s1280_s15  ;;  %s4342_s15 = sld [smem:[#allocation20_spill]] }
  0x6b   : > { %3449 = vmatmul.mubr.msk.f32.vlgmr.msra.gmra.mrb[2].mxu0 %vm1441_vm7, %v1436_v27  ;;  %v1282_v37 = vmul.f32 %v1281_v30, %v1112_v32  ;;  %v4095_v30 = vsub.s32 1, %v4036_v58 }
  0x6c   : > { %3463 = vmatprep.mubr.msk.f32.mxu0 %vm3767_vm5, %v3766_v4  ;;  %3462 = vmatpush3.msk.msra.mxu0 %vm1578_vm8, %v3773_v0 }
  0x6d   : > { %3580 = vmatprep.subr.bf16.mxu0 %v3768_v8 }
  0x6f   : > { %3464 = vmatmul.mubr.msk.f32.vlgmr.msra.gmra.mrb[4].mxu0 %vm1116_vm4, %v4053_v1 }
  0x70   : > { %3479 = vmatprep.mubr.msk.f32.mxu0 %vm3767_vm5, %v3766_v4 }
  0xd0   : > { %v1271_v31 = vpop.permute.xlu0 %1270 }
  0xd5   : > { %v1534_v2 = vpop.permute.xlu1 %1533 }
 0x133   : > { %v1186_v13 = vpop.f32.mrb[0].mxu1 }
 0x134   : > { %v1190_v14 = vmax.f32 %v1186_v13, 0.0  ;;  %v3418_v15 = vpop.f32.mrb[1].mxu1  ;;  %v3584_v13 = vpack.c.bf16 %v2006_v12, %v2005_v10 }
 0x135   : > { %v4087_v15 = vsub.s32 0, %v4036_v58 }
 0x136   : > { %v1191_v16 = vmul.f32 %v1190_v14, %v1113_v9  ;;  %v1359_v40 = vpop.f32.mrb[0].mxu0  ;;  %v2004_v9 = vld [vmem:[%s3844_s30 + $0x8] sm:$0xff] }
 0x137   : > { %v3432_v41 = vpop.f32.mrb[1].mxu0  ;;  %v3581_v11 = vpack.c.bf16 %v2004_v9, %v2003_v7  ;;  %v1775_v26 = vrot.slane %v4049_v63, %v4087_v15 }
 0x138   : > { %3424 = vmatmul.mubr.msk.f32.vlgmr.msra.gmra.mrb[2].mxu1 %vm1194_vm6, %v1191_v16 }
 0x139   : > { %3437 = vmatprep.mubr.msk.f32.mxu1 %vm3767_vm5, %v3766_v4  ;;  %3573 = vmatpush3.bf16.msra.mxu1 %v3572_v23 }
 0x13a   : > { %3451 = vmatprep.subr.mxu1 %v3766_v4  ;;  %3582 = vmatpush3.bf16.msra.mxu0 %v3581_v11 }
 0x13b   : > { %3583 = vmatprep.subr.bf16.mxu0 %v3768_v8 }
 0x13e   : > { %v1511_v42 = vpop.f32.mrb[2].mxu0  ;;  %3585 = vmatpush3.bf16.msra.mxu0 %v3584_v13 }
 0x13f   : > { %v3450_v43 = vpop.f32.mrb[3].mxu0  ;;  %3595 = vmatprep.subr.bf16.mxu0 %v3768_v8 }
 0x142   : > { %v1863_v17 = vpop.f32.mrb[4].mxu0 }
 0x143   : > { %v3465_v20 = vpop.f32.mrb[5].mxu0  ;;  %v1870_v32 = vrot.slane %v1863_v17, %v4087_v15 }
 0x20b   : > { %v1264_v29 = vpop.f32.mrb[2].mxu1 }
 0x20c   : > { %v1268_v33 = vmax.f32 %v1264_v29, 0.0  ;;  %v3425_v34 = vpop.f32.mrb[3].mxu1 }
 0x20e   : > { %v1273_v36 = vmul.f32 %v1271_v31, %v1268_v33 }
 0x210   : > { %v1279_v38 = vmul.f32 %v1278_v35, %v1273_v36  ;;  %v1984_v36 = vrot.slane %v4053_v1, %v4087_v15 }
 0x212   : > { %v1283_v39 = vadd.f32 %v1282_v37, %v1279_v38  ;;  %v1782_v37 = vrot.slane %v4049_v63, %v4095_v30  ;;  %v1877_v38 = vrot.slane %v1863_v17, %v4095_v30 }
 0x214   : > { %3438 = vmatmul.mubr.msk.f32.vlgmr.msra.gmra.mrb[4].mxu1 %vm1194_vm6, %v1283_v39 }
 0x215   : > { %3453 = vmatprep.mubr.msk.f32.mxu1 %vm3767_vm5, %v3766_v4  ;;  %3452 = vmatpush3.msk.msra.mxu1 %vm1578_vm8, %v3773_v0 }
 0x216   : > { %3456 = vmatprep.subr.mxu1 %v3766_v4 }
 0x218   : > { %3454 = vmatmul.mubr.msk.f32.vlgmr.msra.gmra.mrb[6].mxu1 %vm1116_vm4, %v4049_v63 }
 0x219   : > { %3457 = vmatpush3.msk.msra.mxu1 %vm1677_vm9, %v3773_v0  ;;  %3458 = vmatprep.mubr.msk.f32.mxu1 %vm3767_vm5, %v3766_v4 }
 0x21a   : > { %3466 = vmatprep.subr.mxu1 %v3766_v4 }
 0x21c   : > { %3459 = vmatmul.mubr.msk.f32.vlgmr.msra.gmra.mrb[8].mxu1 %vm1116_vm4, %v4049_v63  ;;  %v1975_v63 = vsub.s32 4, %v4036_v58 }
 0x21d   : > { %3467 = vmatpush3.msk.msra.mxu1 %vm1677_vm9, %v3773_v0  ;;  %3468 = vmatprep.mubr.msk.f32.mxu1 %vm3767_vm5, %v3766_v4 }
 0x21e   : > { %3586 = vmatprep.subr.bf16.mxu1 %v3768_v8 }
 0x220   : > { %3469 = vmatmul.mubr.msk.f32.vlgmr.msra.gmra.mrb[10].mxu1 %vm1116_vm4, %v4053_v1 }
 0x221   : > { %3486 = vmatprep.mubr.msk.f32.mxu1 %vm3767_vm5, %v3766_v4 }
 0x2e7   : > { %v1432_v44 = vpop.f32.mrb[4].mxu1 }
 0x2e8   : > { %v1433_v45 = vadd.f32 %v1432_v44, %v1359_v40  ;;  %v3439_v46 = vpop.f32.mrb[5].mxu1  ;;  %v1991_v40 = vrot.slane %v4053_v1, %v4095_v30 }
 0x2e9   : > { %v1574_v46 = vld [vmem:[%s3859_s20] sm:$0x3f] }
 0x2ea   : > { %v1515_v48 = vadd.f32 %v1511_v42, %v1433_v45  ;;  %v1976_v11 = vrot.slane %v1574_v46, %v1975_v63  ;;  %v3775_v63 = vmov 0  }
 0x2eb   : > { %v1650_v16 = vpop.f32.mrb[6].mxu1  ;;  %3683 = vset.pattern.permute.xlu0 %v3775_v63  ;;  %3682 = vset.pattern.permute.xlu1 %v3775_v63 }
 0x2ec   : > { %v1523_v49 = vadd.f32 %v3313_v47, %v1515_v48  ;;  %v1657_v18 = vrot.slane %v1650_v16, %v4087_v15  ;;  %v3455_v19 = vpop.f32.mrb[7].mxu1  ;;  %v1664_v33 = vrot.slane %v1650_v16, %v4095_v30  ;;  %v1671_v48 = vrot.slane %v1574_v46, %v4087_v15 }
 0x2ed   : > { %v1997_v16 = vsub.s32 5, %v4036_v58 }
 0x2ee   : > { %3684 = vtanh.f32 %v1523_v49  ;;  %v3314_v51 = vmul.f32 -1.442695, %v1523_v49  ;;  %v1767_v49 = vrot.slane %v1574_v46, %v4095_v30 }
 0x2ef   : > { %v1746_v21 = vpop.f32.mrb[8].mxu1 }
 0x2f0   : > { %3686 = vpow2.f32 %v3314_v51  ;;  %v1753_v22 = vrot.slane %v1746_v21, %v4087_v15  ;;  %v3460_v23 = vpop.f32.mrb[9].mxu1  ;;  %v1760_v35 = vrot.slane %v1746_v21, %v4095_v30 }
 0x2f1   : > { %v1998_v23 = vrot.slane %v1574_v46, %v1997_v16 }
 0x2f3   : > { %v1955_v24 = vpop.f32.mrb[10].mxu1 }
 0x2f4   : > { %v3470_v25 = vpop.f32.mrb[11].mxu1  ;;  %v1962_v34 = vrot.slane %v1955_v24, %v4087_v15  ;;  %v1969_v39 = vrot.slane %v1955_v24, %v4095_v30 }
 0x2f8   : > { %v3685_v50 = vpop.eup %3684 }
 0x2f9   : > { %1538 = vrot.lane.b32.xlu0 %v3685_v50, %s4318_s4  ;;  %v1788_v50 = vsub.s32 2, %v4036_v58 }
 0x2fa   : > { %v3687_v52 = vpop.eup %3686 }
 0x2fb   : > { %v1528_v53 = vadd.f32 1.0, %v3687_v52 }
 0x2fd   : > { %3688 = vrcp.f32 %v1528_v53 }
 0x307   : > { %v4032_v54 = vpop.eup %3688 }
 0x308   : > { %v1536_v3 = vmul.f32 %v4032_v54, %v1534_v2 }
 0x36b   : > { %v1539_v55 = vpop.permute.xlu0 %1538 }
 0x36c   : > { %v1541_v56 = vmul.f32 %v4032_v54, %v1539_v55  ;;  %v1883_v55 = vsub.s32 3, %v4036_v58 }
 0x36e   : > { %1543 = vrot.lane.b32.xlu1 %v1541_v56, %s3770_s18 }
 0x372   : > { %1554 = vrot.lane.b32.xlu1 %v4043_v60, %s4315_s27  ;;  %s4347_s27 = sld [smem:[#allocation25_spill]] }
 0x376   : > { %1659 = vbcast.lane.b32.xlu1 %v1657_v18, 256 }
 0x37a   : > { %1755 = vbcast.lane.b32.xlu1 %v1753_v22, 256 }
 0x37e   : > { %1777 = vbcast.lane.b32.xlu1 %v1775_v26, 256 }
 0x382   : > { %1872 = vbcast.lane.b32.xlu1 %v1870_v32, 256 }
 0x386   : > { %1964 = vbcast.lane.b32.xlu1 %v1962_v34, 256 }
 0x38a   : > { %1986 = vbcast.lane.b32.xlu1 %v1984_v36, 256 }
 0x3e0   : > { %v1544_v5 = vpop.permute.xlu1 %1543 }
 0x3e1   : > { %v4076_v6 = vadd.f32 %v1544_v5, %v1536_v3  ;;  %v1884_v3 = vrot.slane %v1574_v46, %v1883_v55  ;;  %v3774_v5 = vmov 1966171168  }
 0x3e2   : > { %v2081_v7 = vunpack.c.l.s4 %v3774_v5 }
 0x3e3   : > { %3690 = vtanh.f32 %v4076_v6 }
 0x3e4   : > { %v1555_v28 = vpop.permute.xlu1 %1554  ;;  %v2082_v17 = vunpack.c.0.s8 %v2081_v7 }
 0x3e6   : > { %v4126_v24 = vsub.s32 %v2082_v17, %v4036_v58 }
 0x3e8   : > { %v1660_v42 = vpop.permute.xlu1 %1659 }
 0x3e9   : > { %v1672_v52 = vmul.f32 %v1671_v48, %v1660_v42 }
 0x3ec   : > { %v1756_v44 = vpop.permute.xlu1 %1755 }
 0x3ed   : > { %v3691_v14 = vpop.eup %3690  ;;  %v1768_v53 = vmul.f32 %v1767_v49, %v1756_v44 }
 0x3ee   : > { %1549 = vrot.lane.b32.xlu0 %v3691_v14, %s4318_s4 }
 0x3ef   : > { %v1770_v0 = vadd.f32 %v1768_v53, %v1672_v52 }
 0x3f0   : > { %v1778_v47 = vpop.permute.xlu1 %1777 }
 0x3f4   : > { %v1873_v56 = vpop.permute.xlu1 %1872 }
 0x3f5   : > { %v1885_v14 = vmul.f32 %v1884_v3, %v1873_v56 }
 0x3f8   : > { %v1965_v12 = vpop.permute.xlu1 %1964 }
 0x3f9   : > { %v1977_v22 = vmul.f32 %v1976_v11, %v1965_v12 }
 0x3fc   : > { %v1987_v25 = vpop.permute.xlu1 %1986 }
 0x3fd   : > { %v1999_v32 = vmul.f32 %v1998_v23, %v1987_v25 }
 0x460   : > { %v1550_v27 = vpop.permute.xlu0 %1549 }
 0x461   : > { %v1552_v29 = vmul.f32 %v4032_v54, %v1550_v27  ;;  %v1789_v54 = vrot.slane %v1574_v46, %v1788_v50 }
 0x463   : > { %v1557_v31 = vmul.f32 %v1555_v28, %v1552_v29  ;;  %v1790_v2 = vmul.f32 %v1789_v54, %v1778_v47  ;;  %v4135_v47 = vld [vmem:[#allocation10 + $0x8] sm:$0xff] }
 0x465   : > { %1560 = vrot.lane.b32.xlu0 %v1557_v31, %s3770_s18  ;;  %v1792_v13 = vadd.f32 %v1790_v2, %v1770_v0 }
 0x467   : > { %v1887_v21 = vadd.f32 %v1885_v14, %v1792_v13  ;;  %v2155_v13 = vstv %s3961_s22  ;;  %s4349_s22 = sld [smem:[#allocation30_spill]] }
 0x468   : > { %vm2156_vm12 = vcmp.le.s32.totalorder %v4038_v59, %v2155_v13 }
 0x469   : > { %1666 = vbcast.lane.b32.xlu0 %v1664_v33, 256  ;;  %v1979_v31 = vadd.f32 %v1977_v22, %v1887_v21 }
 0x46d   : > { %1762 = vbcast.lane.b32.xlu0 %v1760_v35, 256 }
 0x471   : > { %1784 = vbcast.lane.b32.xlu0 %v1782_v37, 256 }
 0x475   : > { %1879 = vbcast.lane.b32.xlu0 %v1877_v38, 256 }
 0x479   : > { %1971 = vbcast.lane.b32.xlu0 %v1969_v39, 256  ;;  %v2001_v39 = vadd.f32 %v1999_v32, %v1979_v31  ;;  %v2225_v31 = vld [vmem:[%s4339_s0 + $0x8] sm:$0xff] }
 0x47d   : > { %1993 = vbcast.lane.b32.xlu0 %v1991_v40, 256 }
 0x4d7   : > { %v4110_v41 = vpop.permute.xlu0 %1560 }
 0x4d8   : > { %1564 = vst.msk [vmem:[#allocation2] sm:$0x3] %vm1563_vm10, %v4110_v41  ;;  %3480 = vmatmul.mubr.msk.f32.vlgmr.msra.gmra.mrb[6].mxu0 %vm1441_vm7, %v4110_v41 }
 0x4d9   : > { %3508 = vmatprep.mubr.msk.f32.mxu0 %vm3767_vm5, %v3766_v4 }
 0x4db   : > { %v1667_v43 = vpop.permute.xlu0 %1666 }
 0x4dc   : > { %v1673_v57 = vmul.f32 %v1671_v48, %v1667_v43  ;;  %v4132_v43 = vld [vmem:[#allocation10] sm:$0xff] }
 0x4df   : > { %v1763_v45 = vpop.permute.xlu0 %1762 }
 0x4e0   : > { %v1769_v61 = vmul.f32 %v1767_v49, %v1763_v45 }
 0x4e2   : > { %v1771_v9 = vadd.f32 %v1769_v61, %v1673_v57  ;;  %v2135_v61 = vld [vmem:[%s4338_s28] sm:$0x3]  ;;  %s4343_s28 = sld [smem:[#allocation22_spill]] }
 0x4e3   : > { %v1785_v51 = vpop.permute.xlu0 %1784  ;;  %v2140_v0 = vrot.slane %v2135_v61, %v4087_v15 }
 0x4e4   : > { %v1791_v10 = vmul.f32 %v1789_v54, %v1785_v51  ;;  %v3326_v51 = vld [vmem:[%s3854_s12] ss:$0 sm:$0xff] }
 0x4e6   : > { %v1793_v19 = vadd.f32 %v1791_v10, %v1771_v9 }
 0x4e7   : > { %v1880_v62 = vpop.permute.xlu0 %1879 }
 0x4e8   : > { %v1886_v20 = vmul.f32 %v1884_v3, %v1880_v62  ;;  %v2147_v62 = vrot.slane %v2135_v61, %v4095_v30 }
 0x4ea   : > { %v1888_v26 = vadd.f32 %v1886_v20, %v1793_v19 }
 0x4eb   : > { %v1972_v18 = vpop.permute.xlu0 %1971 }
 0x4ec   : > { %v1978_v27 = vmul.f32 %v1976_v11, %v1972_v18  ;;  %v2167_v11 = vsub.s32 %v4038_v59, %v4036_v58 }
 0x4ee   : > { %v1980_v35 = vadd.f32 %v1978_v27, %v1888_v26 }
 0x4ef   : > { %v1994_v28 = vpop.permute.xlu0 %1993 }
 0x4f0   : > { %v2000_v36 = vmul.f32 %v1998_v23, %v1994_v28 }
 0x4f2   : > { %v2002_v44 = vadd.f32 %v2000_v36, %v1980_v35  ;;  %v4164_v36 = vld [vmem:[#allocation9 + $0x8] sm:$0xff] }
 0x5ab   : > { %v2075_v29 = vpop.f32.mrb[6].mxu0 }
 0x5ac   : > { %v2086_v33 = vrot.slane %v2075_v29, %v4126_v24  ;;  %v3481_v34 = vpop.f32.mrb[7].mxu0  ;;  %v2224_v29 = vld [vmem:[%s4339_s0] sm:$0xff]  ;;  %s4353_s0 = scalar_lea.vmem %s3799_s17, %s3967_s26 }
 0x5ad   : > { %v3587_v35 = vpack.c.bf16 %v2225_v31, %v2224_v29 }
 0x5ae   : > { %v2087_v37 = vcombine.high %v2086_v33, %v2086_v33  ;;  %v2094_v38 = vrot.slane %v2086_v33, %v4126_v24 }
 0x5af   : > { %3588 = vmatpush3.bf16.msra.mxu1 %v3587_v35 }
 0x5b0   : > { %v2101_v40 = vrot.slane %v2087_v37, %v4126_v24  ;;  %v2105_v42 = vrot.slane %v2094_v38, %v4087_v15  ;;  %3589 = vmatprep.subr.bf16.mxu1 %v3768_v8  ;;  %v4166_v37 = vld [vmem:[#allocation9] sm:$0xff] }
 0x5b2   : > { %v2109_v45 = vrot.slane %v2101_v40, %v4087_v15  ;;  %v2112_v46 = vadd.f32 %v2105_v42, %v2001_v39 }
 0x5b4   : > { %v2113_v48 = vadd.f32 %v2109_v45, %v2002_v44  ;;  %v2116_v49 = vadd.f32 %v4132_v43, %v2112_v46 }
 0x5b6   : > { %v2117_v50 = vadd.f32 %v4135_v47, %v2113_v48  ;;  %3692 = vtanh.f32 %v2116_v49 }
 0x5b8   : > { %3694 = vtanh.f32 %v2117_v50 }
 0x5c0   : > { %v3693_v52 = vpop.eup %3692 }
 0x5c1   : > { %v2127_v53 = vmul.f32 %v3693_v52, %v3326_v51 }
 0x5c2   : > { %v3695_v54 = vpop.eup %3694 }
 0x5c3   : > { %v2129_v55 = vsel %vm1194_vm6, %v2127_v53, 0.0  ;;  %v2128_v56 = vmul.f32 %v3695_v54, %v3326_v51  ;;  %v2309_v53 = vld [vmem:[%s4340_s16] sm:$0xff]  ;;  %v2310_v54 = vld [vmem:[%s4340_s16 + $0x8] sm:$0xff] }
 0x5c4   : > { %2130 = vadd.xlane.f32.xlu1 %v2129_v55 }
 0x5c5   : > { %v2132_v57 = vsel %vm1194_vm6, %v2128_v56, 0.0 }
 0x5c6   : > { %2133 = vadd.xlane.f32.xlu0 %v2132_v57 }
 0x5d5   : > { %2149 = vbcast.lane.b32.xlu1 %v2147_v62, 256  ;;  %v3590_v62 = vpack.c.bf16 %v2310_v54, %v2309_v53  ;;  %v2630_v53 = vld [vmem:[%s4347_s27 + $0x10] sm:$0xff]  ;;  %v2631_v54 = vld [vmem:[%s4347_s27 + $0x18] sm:$0xff] }
 0x5dc   : > { %2142 = vbcast.lane.b32.xlu0 %v2140_v0, 256  ;;  %v2311_v0 = vld [vmem:[%s4340_s16 + $0x10] sm:$0xff] }
 0x651   : > { %v2131_v2 = vpop.xlane.xlu1 %2130 }
 0x653   : > { %v2134_v3 = vpop.xlane.xlu0 %2133 }
 0x655   : > { %v2150_v5 = vpop.permute.xlu1 %2149 }
 0x656   : > { %v2154_v7 = vadd.f32 %v2150_v5, %v2134_v3 }
 0x657   : > { %v2143_v9 = vpop.permute.xlu0 %2142 }
 0x658   : > { %v2153_v10 = vadd.f32 %v2143_v9, %v2131_v2  ;;  %2163 = vperm.xlu0 %3683, %v2154_v7   ;;  %v2312_v2 = vld [vmem:[%s4340_s16 + $0x18] sm:$0xff] }
 0x659   : > { %v3593_v3 = vpack.c.bf16 %v2312_v2, %v2311_v0 }
 0x65a   : > { %2160 = vperm.xlu1 %3682, %v2153_v10   ;;  %v3327_v10 = vld [vmem:[%s4342_s15] ss:$0 sm:$0xff]  ;;  %s4346_s15 = sld [smem:[#allocation24_spill]] }
 0x660   : > { %v3331_v31 = vld [vmem:[%s4346_s15] ss:$0 sm:$0xff]  ;;  %s4351_s15 = sld [smem:[#allocation32_spill]] }
 0x6d7   : > { %v2164_v12 = vpop.permute.xlu0 %2163 }
 0x6d8   : > { %v2172_v16 = vrot.slane %v2164_v12, %v2167_v11 }
 0x6d9   : > { %v2161_v14 = vpop.permute.xlu1 %2160 }
 0x6da   : > { %v2168_v17 = vrot.slane %v2161_v14, %v2167_v11 }
 0x6dc   : > { %v2174_v18 = vsel %vm2173_vm11, %v2172_v16, %v2168_v17 }
 0x6dd   : > { %v2176_v19 = vsel %vm2156_vm12, %v2174_v18, -inf }
 0x6de   : > { %v2178_v20 = vsel %vm2177_vm13, %v2176_v19, -inf }
 0x6df   : > { %2179 = vmax.xlane.f32.xlu1 %v2178_v20 }
 0x76c   : > { %v2180_v21 = vpop.xlane.xlu1 %2179 }
 0x76d   : > { %v2181_v22 = vsub.f32 %v2176_v19, %v2180_v21  ;;  %v3329_v19 = vld [vmem:[%s4343_s28] ss:$0 sm:$0xff]  ;;  %s4348_s28 = sld [smem:[#allocation27_spill]] }
 0x76f   : > { %v2182_v23 = vmul.f32 1.442695, %v2181_v22 }
 0x771   : > { %3696 = vpow2.f32 %v2182_v23 }
 0x77b   : > { %v3697_v25 = vpop.eup %3696 }
 0x77c   : > { %v2184_v26 = vsel %vm2177_vm13, %v3697_v25, 0.0 }
 0x77d   : > { %2185 = vadd.xlane.f32.xlu0 %v2184_v26  ;;  %v2492_v26 = vld [vmem:[%s4344_s7 + $0x8] sm:$0xff] }
 0x80a   : > { %v2186_v59 = vpop.xlane.xlu0 %2185 }
 0x80b   : > { %3698 = vrcp.f32 %v2186_v59 }
 0x815   : > { %v3699_v27 = vpop.eup %3698 }
 0x816   : > { %v2188_v28 = vmul.f32 %v3699_v27, %v3697_v25  ;;  %v2491_v25 = vld [vmem:[%s4344_s7] sm:$0xff] }
 0x817   : > { %v3602_v59 = vpack.c.bf16 %v2492_v26, %v2491_v25  ;;  %v2632_v27 = vld [vmem:[%s4345_s11] sm:$0xff] }
 0x818   : > { %2221 = vst.msk [vmem:[#allocation7] sm:$0x3] %vm2177_vm13, %v2188_v28  ;;  %v2222_v32 = vadd.f32 %v2188_v28, %v4053_v1  ;;  %3108 = vst.msk [vmem:[%s1091_s6] sm:$0x3] %vm2177_vm13, %v2188_v28  ;;  %v2199_v33 = vrot.slane %v2188_v28, %v4095_v30  ;;  %v2192_v34 = vrot.slane %v2188_v28, %v4087_v15  ;;  %s4341_s6 = sld [smem:[#allocation23_spill]]  ;;  %v2633_v28 = vld [vmem:[%s4345_s11 + $0x8] sm:$0xff] }
 0x819   : > { %v3605_v29 = vpack.c.bf16 %v2633_v28, %v2632_v27 }
 0x81a   : > { %2223 = vst.msk [vmem:[#allocation8] sm:$0x3] %vm2177_vm13, %v2222_v32  ;;  %2201 = vbcast.lane.b32.xlu0 %v2199_v33, 256  ;;  %2194 = vbcast.lane.b32.xlu1 %v2192_v34, 256  ;;  %v2566_v32 = vstv %s2565_s2  ;;  %s4350_s2 = sld [smem:[#allocation28_spill]] }
 0x81b   : > { %vm2567_vm14 = vcmp.eq.s32.totalorder %v4036_v58, %v2566_v32 }
 0x81e   : > { %v2394_v5 = vld [vmem:[%s4341_s6] sm:$0xff]  ;;  %v2395_v7 = vld [vmem:[%s4341_s6 + $0x8] sm:$0xff]  ;;  %v2396_v16 = vld [vmem:[%s4341_s6 + $0x10] sm:$0xff] }
 0x81f   : > { %v3596_v9 = vpack.c.bf16 %v2395_v7, %v2394_v5  ;;  %v2397_v17 = vld [vmem:[%s4341_s6 + $0x18] sm:$0xff] }
 0x820   : > { %v3599_v18 = vpack.c.bf16 %v2397_v17, %v2396_v16 }
 0x821   : > { %3597 = vmatpush3.bf16.msra.mxu0 %v3596_v9  ;;  %v2910_v9 = vld [vmem:[%s4349_s22] sm:$0xff] }
 0x822   : > { %3598 = vmatprep.subr.bf16.mxu0 %v3768_v8 }
 0x825   : > { %3600 = vmatpush3.bf16.msra.mxu0 %v3599_v18 }
 0x826   : > { %3604 = vmatprep.subr.bf16.mxu0 %v3768_v8 }
 0x88c   : > { %v2202_v1 = vpop.permute.xlu0 %2201  ;;  %v2195_v38 = vpop.permute.xlu1 %2194 }
 0x88d   : > { %v2206_v30 = vmul.f32 %v4164_v36, %v2202_v1  ;;  %v2205_v39 = vmul.f32 %v4166_v37, %v2195_v38  ;;  %v2628_v1 = vld [vmem:[%s4347_s27] sm:$0xff] }
 0x88f   : > { %v2214_v40 = vsel %vm1194_vm6, %v2206_v30, 0.0  ;;  %v2207_v42 = vsel %vm1194_vm6, %v2205_v39, 0.0  ;;  %v2629_v39 = vld [vmem:[%s4347_s27 + $0x8] sm:$0xff] }
 0x890   : > { %v2215_v44 = vrot.slane %v2214_v40, 4  ;;  %v2208_v45 = vrot.slane %v2207_v42, 4 }
 0x892   : > { %v2216_v46 = vadd.f32 %v2215_v44, %v2214_v40  ;;  %v2209_v48 = vadd.f32 %v2208_v45, %v2207_v42  ;;  %v2775_v40 = vld [vmem:[%s4348_s28] sm:$0xff]  ;;  %v2776_v42 = vld [vmem:[%s4348_s28 + $0x8] sm:$0xff]  ;;  %v4210_v44 = vsel %vm2567_vm14, 1.0, %v3766_v4 }
 0x893   : > { %v3614_v58 = vpack.c.bf16 %v2776_v42, %v2775_v40  ;;  %v2627_v42 = vld [vmem:[%s4353_s0] sm:$0x3] }
 0x894   : > { %v2217_v49 = vrot.slane %v2216_v46, 2  ;;  %v2210_v50 = vrot.slane %v2209_v48, 2 }
 0x896   : > { %v2218_v51 = vadd.f32 %v2217_v49, %v2216_v46  ;;  %v2211_v52 = vadd.f32 %v2210_v50, %v2209_v48  ;;  %v3344_v48 = vld [vmem:[%s3934_s25] ss:$0 sm:$0xff]  ;;  %v3608_v49 = vpack.c.bf16 %v2629_v39, %v2628_v1 }
 0x898   : > { %v2219_v55 = vrot.slane %v2218_v51, 1  ;;  %v2212_v56 = vrot.slane %v2211_v52, 1 }
 0x89a   : > { %v2220_v57 = vadd.f32 %v2219_v55, %v2218_v51  ;;  %v2213_v61 = vadd.f32 %v2212_v56, %v2211_v52  ;;  %v2777_v56 = vld [vmem:[%s4348_s28 + $0x10] sm:$0xff] }
 0x89c   : > { %v2235_v63 = vsel %vm2173_vm11, %v2220_v57, %v2213_v61 }
 0x89d   : > { %3487 = vmatmul.mubr.msk.f32.vlgmr.msra.gmra.mrb[12].mxu1 %vm1194_vm6, %v2235_v63 }
 0x89e   : > { %3591 = vmatpush3.bf16.msra.mxu1 %v3590_v62  ;;  %3497 = vmatprep.mubr.msk.f32.mxu1 %vm3767_vm5, %v3766_v4 }
 0x89f   : > { %3592 = vmatprep.subr.bf16.mxu1 %v3768_v8 }
 0x8a2   : > { %3594 = vmatpush3.bf16.msra.mxu1 %v3593_v3  ;;  %v3611_v3 = vpack.c.bf16 %v2631_v54, %v2630_v53 }
 0x8a3   : > { %3601 = vmatprep.subr.bf16.mxu1 %v3768_v8 }
 0x970   : > { %v2304_v11 = vpop.f32.mrb[12].mxu1 }
 0x971   : > { %v2305_v12 = vadd.f32 %v3327_v10, %v2304_v11  ;;  %v3488_v13 = vpop.f32.mrb[13].mxu1  ;;  %v2911_v10 = vld [vmem:[%s4349_s22 + $0x8] sm:$0xff] }
 0x973   : > { %v2308_v14 = vmax.f32 %v2305_v12, 0.0  ;;  %v3620_v12 = vpack.c.bf16 %v2911_v10, %v2910_v9  ;;  %v3345_v10 = vld [vmem:[#allocation14] ss:$0 sm:$0xff] }
 0x975   : > { %3498 = vmatmul.mubr.msk.f32.vlgmr.msra.gmra.mrb[14].mxu1 %vm1441_vm7, %v2308_v14 }
 0x976   : > { %3515 = vmatprep.mubr.msk.f32.mxu1 %vm3767_vm5, %v3766_v4  ;;  %3603 = vmatpush3.bf16.msra.mxu1 %v3602_v59 }
 0x977   : > { %3607 = vmatprep.subr.bf16.mxu1 %v3768_v8 }
 0xa48   : > { %v2389_v20 = vpop.f32.mrb[14].mxu1 }
 0xa49   : > { %v2390_v21 = vadd.f32 %v3329_v19, %v2389_v20  ;;  %v3499_v22 = vpop.f32.mrb[15].mxu1 }
 0xa4b   : > { %v2393_v23 = vmax.f32 %v2390_v21, 0.0 }
 0xa4d   : > { %3509 = vmatmul.mubr.msk.f32.vlgmr.msra.gmra.mrb[8].mxu0 %vm1441_vm7, %v2393_v23 }
 0xa4e   : > { %3522 = vmatprep.mubr.msk.f32.mxu0 %vm3767_vm5, %v3766_v4  ;;  %3606 = vmatpush3.bf16.msra.mxu0 %v3605_v29 }
 0xa4f   : > { %3613 = vmatprep.subr.bf16.mxu0 %v3768_v8 }
 0xb20   : > { %v2474_v33 = vpop.f32.mrb[8].mxu0 }
 0xb21   : > { %v2475_v34 = vadd.f32 %v3331_v31, %v2474_v33  ;;  %v3510_v35 = vpop.f32.mrb[9].mxu0  ;;  %v3338_v31 = vld [vmem:[%s4350_s2] ss:$0 sm:$0xff]  ;;  %s4352_s2 = sld [smem:[#allocation29_spill]] }
 0xb22   : > { %v2861_v35 = vld [vmem:[#allocation5] sm:$0x3] }
 0xb23   : > { %v2479_v38 = vrot.slane %v2475_v34, 1  ;;  %v2482_v30 = vadd.f32 %v2475_v34, %v2213_v61  ;;  %v2778_v61 = vld [vmem:[%s4348_s28 + $0x18] sm:$0xff] }
 0xb24   : > { %v3617_v7 = vpack.c.bf16 %v2778_v61, %v2777_v56 }
 0xb25   : > { %v2483_v45 = vadd.f32 %v2479_v38, %v2220_v57  ;;  %v2575_v46 = vrot.slane %v2482_v30, %v4087_v15  ;;  %v3086_v62 = vmul.f32 %v3344_v48, %v2482_v30 }
 0xb27   : > { %v2486_v50 = vrot.slane %v2483_v45, 7  ;;  %v2579_v51 = vrot.slane %v2483_v45, %v4087_v15  ;;  %v2580_v52 = vmul.f32 %v4210_v44, %v2575_v46  ;;  %v3087_v55 = vmul.f32 %v3344_v48, %v2483_v45  ;;  %v2909_v54 = vld [vmem:[%s4352_s2 + $0x18] sm:$0xff] }
 0xb29   : > { %v2581_v63 = vmul.f32 %v4210_v44, %v2579_v51  ;;  %v2582_v57 = vadd.f32 %v2580_v52, %v4166_v37  ;;  %v2487_v0 = vsel %vm2173_vm11, %v2486_v50, %v2482_v30  ;;  %v3090_v2 = vrot.slane %v3087_v55, 7  ;;  %v2906_v50 = vld [vmem:[%s4352_s2] sm:$0xff]  ;;  %v2907_v51 = vld [vmem:[%s4352_s2 + $0x8] sm:$0xff]  ;;  %v2908_v52 = vld [vmem:[%s4352_s2 + $0x10] sm:$0xff] }
 0xb2a   : > { %3516 = vmatmul.mubr.msk.f32.vlgmr.msra.gmra.mrb[16].mxu1 %vm1194_vm6, %v2487_v0  ;;  %3523 = vmatmul.mubr.msk.f32.vlgmr.msra.gmra.mrb[10].mxu0 %vm1194_vm6, %v2487_v0  ;;  %2490 = vst.msk [vmem:[#allocation6] sm:$0x3] %vm2489_vm15, %v2487_v0  ;;  %v3623_v53 = vpack.c.bf16 %v2907_v51, %v2906_v50  ;;  %v3626_v55 = vpack.c.bf16 %v2909_v54, %v2908_v52 }
 0xb2b   : > { %v2583_v5 = vadd.f32 %v2581_v63, %v4164_v36  ;;  %2584 = vst.msk [vmem:[#allocation9] sm:$0xff] %vm1194_vm6, %v2582_v57  ;;  %3609 = vmatpush3.bf16.msra.mxu1 %v3608_v49  ;;  %3615 = vmatpush3.bf16.msra.mxu0 %v3614_v58  ;;  %v3091_v37 = vsel %vm2173_vm11, %v3090_v2, %v3086_v62  ;;  %v2774_v36 = vld [vmem:[#allocation4] sm:$0x3] }
 0xb2c   : > { %3610 = vmatprep.subr.bf16.mxu1 %v3768_v8  ;;  %3616 = vmatprep.subr.bf16.mxu0 %v3768_v8  ;;  %v4234_v11 = vsel %vm2489_vm15, %v3091_v37, 0.0 }
 0xb2d   : > { %2585 = vst.msk [vmem:[#allocation9 + $0x8] sm:$0xff] %vm1194_vm6, %v2583_v5  ;;  %3533 = vmatprep.mubr.msk.f32.mxu1 %vm3767_vm5, %v3766_v4  ;;  %3544 = vmatprep.mubr.msk.f32.mxu0 %vm3767_vm5, %v3766_v4 }
 0xb2f   : > { %3612 = vmatpush3.bf16.msra.mxu1 %v3611_v3  ;;  %3618 = vmatpush3.bf16.msra.mxu0 %v3617_v7  ;;  %v1558_v7 = vmul.f32 %v4076_v6, %v4043_v60 }
 0xb30   : > { %3619 = vmatprep.subr.bf16.mxu1 %v3768_v8  ;;  %3622 = vmatprep.subr.bf16.mxu0 %v3768_v8 }
 0xb32   : > { %3534 = vmatmul.mubr.msk.f32.vlgmr.msra.gmra.mrb[18].mxu1 %vm1441_vm7, %v4110_v41  ;;  %3545 = vmatmul.mubr.msk.f32.vlgmr.msra.gmra.mrb[12].mxu0 %vm1441_vm7, %v2774_v36 }
 0xb33   : > { %3621 = vmatpush3.bf16.msra.mxu1 %v3620_v12  ;;  %3551 = vmatprep.mubr.msk.f32.mxu1 %vm3767_vm5, %v3766_v4 }
 0xb34   : > { %3562 = vmatprep.mubr.msk.f32.mxu0 %vm3767_vm5, %v3766_v4  ;;  %3624 = vmatpush3.bf16.msra.mxu0 %v3623_v53 }
 0xb35   : > { %3625 = vmatprep.subr.bf16.mxu0 %v3768_v8 }
 0xb36   : > { %3552 = vmatmul.mubr.msk.f32.vlgmr.msra.gmra.mrb[20].mxu1 %vm1194_vm6, %v2487_v0 }
 0xb38   : > { %3627 = vmatpush3.bf16.msra.mxu0 %v3626_v55 }
 0xbfd   : > { %v2561_v13 = vpop.f32.mrb[16].mxu1  ;;  %v2700_v14 = vpop.f32.mrb[10].mxu0 }
 0xbfe   : > { %v2595_v16 = vrot.slane %v2561_v13, %v4126_v24  ;;  %v3517_v17 = vpop.f32.mrb[17].mxu1  ;;  %v3524_v18 = vpop.f32.mrb[11].mxu0 }
 0xc00   : > { %v2596_v19 = vcombine.high %v2595_v16, %v2595_v16  ;;  %v2603_v41 = vrot.slane %v2595_v16, %v4126_v24 }
 0xc02   : > { %v2610_v20 = vrot.slane %v2596_v19, %v4126_v24  ;;  %v2614_v21 = vrot.slane %v2603_v41, %v4087_v15 }
 0xc04   : > { %v2618_v22 = vrot.slane %v2610_v20, %v4087_v15  ;;  %v2621_v4 = vmul.f32 %v4210_v44, %v2614_v21 }
 0xc05   : > { %v2770_v23 = vpop.f32.mrb[18].mxu1  ;;  %v2848_v25 = vpop.f32.mrb[12].mxu0 }
 0xc06   : > { %v2622_v26 = vmul.f32 %v4210_v44, %v2618_v22  ;;  %v2623_v59 = vadd.f32 %v2621_v4, %v4132_v43  ;;  %v2771_v27 = vadd.f32 %v2770_v23, %v2700_v14  ;;  %v3535_v28 = vpop.f32.mrb[19].mxu1  ;;  %v3546_v29 = vpop.f32.mrb[13].mxu0  ;;  %v3343_v44 = vld [vmem:[%s4351_s15] ss:$0 sm:$0xff] }
 0xc08   : > { %v2624_v32 = vadd.f32 %v2622_v26, %v4135_v47  ;;  %2625 = vst.msk [vmem:[#allocation10] sm:$0xff] %vm1194_vm6, %v2623_v59  ;;  %v2852_v24 = vadd.f32 %v2848_v25, %v2771_v27 }
 0xc09   : > { %v4262_v33 = vpop.f32.mrb[20].mxu1 }
 0xc0a   : > { %2626 = vst.msk [vmem:[#allocation10 + $0x8] sm:$0xff] %vm1194_vm6, %v2624_v32  ;;  %v2860_v15 = vadd.f32 %v3338_v31, %v2852_v24  ;;  %v3553_v34 = vpop.f32.mrb[21].mxu1 }
 0xc0c   : > { %3700 = vtanh.f32 %v2860_v15  ;;  %v3339_v47 = vmul.f32 -1.442695, %v2860_v15 }
 0xc0e   : > { %3702 = vpow2.f32 %v3339_v47 }
 0xc16   : > { %v3701_v43 = vpop.eup %3700 }
 0xc17   : > { %2875 = vrot.lane.b32.xlu1 %v3701_v43, %s4318_s4  ;;  %s4354_s4 = smov 96  }
 0xc18   : > { %v3703_v1 = vpop.eup %3702 }
 0xc19   : > { %v2865_v38 = vadd.f32 1.0, %v3703_v1 }
 0xc1b   : > { %2870 = vrot.lane.b32.xlu1 %v2861_v35, %s3770_s18  ;;  %3704 = vrcp.f32 %v2865_v38 }
 0xc25   : > { %v3705_v30 = vpop.eup %3704 }
 0xc89   : > { %v2876_v39 = vpop.permute.xlu1 %2875 }
 0xc8a   : > { %v2878_v40 = vmul.f32 %v3705_v30, %v2876_v39 }
 0xc8c   : > { %2880 = vrot.lane.b32.xlu0 %v2878_v40, %s3770_s18 }
 0xc8d   : > { %v2871_v45 = vpop.permute.xlu1 %2870 }
 0xc8e   : > { %v2873_v46 = vmul.f32 %v3705_v30, %v2871_v45 }
 0xc90   : > { %2891 = vrot.lane.b32.xlu0 %v2627_v42, %s4354_s4 }
 0xc94   : > { %3068 = vrot.lane.b32.xlu0 %v3343_v44, %s4354_s4 }
 0xcfe   : > { %v2881_v48 = vpop.permute.xlu0 %2880 }
 0xcff   : > { %v2883_v49 = vadd.f32 %v2881_v48, %v2873_v46 }
 0xd01   : > { %3706 = vtanh.f32 %v2883_v49  ;;  %v2895_v2 = vmul.f32 %v2883_v49, %v2627_v42 }
 0xd02   : > { %v2892_v56 = vpop.permute.xlu0 %2891 }
 0xd06   : > { %v3069_v57 = vpop.permute.xlu0 %3068 }
 0xd0b   : > { %v3707_v58 = vpop.eup %3706 }
 0xd0c   : > { %2886 = vrot.lane.b32.xlu1 %v3707_v58, %s4355_s3  ;;  %s4356_s3 = sld [smem:[#allocation31_spill]] }
 0xd12   : > { %v3342_v60 = vld [vmem:[%s4356_s3] ss:$0 sm:$0xff] }
 0xd7e   : > { %v2887_v61 = vpop.permute.xlu1 %2886 }
 0xd7f   : > { %v2889_v62 = vmul.f32 %v3705_v30, %v2887_v61 }
 0xd81   : > { %v2894_v63 = vmul.f32 %v2892_v56, %v2889_v62 }
 0xd83   : > { %2897 = vrot.lane.b32.xlu1 %v2894_v63, %s3770_s18  ;;  %v3071_v0 = vmul.f32 %v3069_v57, %v2894_v63 }
 0xd87   : > { %3073 = vrot.lane.b32.xlu1 %v3071_v0, %s3770_s18  ;;  %s4357_s18 = scalar_lea.vmem %s3944_s1, %s3967_s26 }
 0xdab   : > { %3094 = vadd.xlane.f32.xlu1 %v4234_v11 }
 0xdbc   : > { %2902 = vrot.lane.b32.xlu1 %v2895_v2, %s4354_s4 }
 0xdf5   : > { %v2898_v3 = vpop.permute.xlu1 %2897 }
 0xdf6   : > { %2900 = vst.msk [vmem:[#allocation4] sm:$0x3] %vm1563_vm10, %v2898_v3  ;;  %3563 = vmatmul.mubr.msk.f32.vlgmr.msra.gmra.mrb[14].mxu0 %vm1441_vm7, %v2898_v3 }
 0xdf9   : > { %v3074_v8 = vpop.permute.xlu1 %3073 }
 0xdfa   : > { %v3076_v5 = vsel %vm1563_vm10, %v3074_v8, 0.0 }
 0xdfb   : > { %3077 = vadd.xlane.f32.xlu0 %v3076_v5 }
 0xe11   : > { %1566 = vrot.lane.b32.xlu0 %v1558_v7, %s4354_s4  ;;  %s4358_s4 = scalar_lea.vmem %s3939_s23, %s3967_s26 }
 0xe38   : > { %v3095_v37 = vpop.xlane.xlu1 %3094 }
 0xe3c   : > { %v2903_v9 = vpop.permute.xlu1 %2902 }
 0xe3d   : > { %2905 = vst.msk [vmem:[#allocation5] sm:$0x3] %vm1563_vm10, %v2903_v9 }
 0xe88   : > { %v3078_v11 = vpop.xlane.xlu0 %3077 }
 0xe89   : > { %v3096_v36 = vadd.f32 %v3095_v37, %v3078_v11 }
 0xe8b   : > { %v3104_v12 = vadd.f32 %v3345_v10, %v3096_v36 }
 0xe8c   : > { %v1567_v13 = vpop.permute.xlu0 %1566 }
 0xe8d   : > { %3107 = vst.msk [vmem:[%s4357_s18] sm:$0x3] %vm3106_vm0, %v3104_v12 }
 0xe8e   : > { %1569 = vst.msk [vmem:[#allocation3] sm:$0x3] %vm1563_vm10, %v1567_v13 }
 0xec9   : > { %v3050_v14 = vpop.f32.mrb[14].mxu0 }
 0xeca   : > { %v3051_v6 = vadd.f32 %v3050_v14, %v4262_v33  ;;  %v3564_v16 = vpop.f32.mrb[15].mxu0 }
 0xecc   : > { %v3061_v17 = vadd.f32 %v3342_v60, %v3051_v6 }
 0xece   : > { %3105 = vst.msk [vmem:[%s4358_s4] sm:$0x3] %vm2177_vm13, %v3061_v17  ;;  %3109 = vst.msk [vmem:[#allocation11] sm:$0x3] %vm2177_vm13, %v3061_v17 }
 0xecf PF: > { %s88_s5 = sadd.s32 1, %s3728_s5  }
 0xed0   : > { %p85_p11 = scmp.ge.s32.totalorder %s88_s5, 10  }
 0xed2   :  { %87 = sbr.rel (!%p85_p11) target bundleno = 69 (0x45), region = 245 }

</bundles_post_ra>
